<compile_context>
chip_gen: v7x
topology: tpu7x:2x2x1
jax: 0.10.0
libtpu: 0.0.40
codegen_flags: <defaults>
</compile_context>

<pallas_src>
import functools

import jax
import jax.numpy as jnp
import numpy as np
from jax.experimental import pallas as pl
from jax.experimental.pallas import tpu as pltpu


# ----------------------------- Pallas kernel ------------------------------- #

def _reduction_kernel(xph_ref, w1_ref, b1_ref, wp_ref, bp_ref, w2_ref, b2_ref,
                      o_ref, x1p_ref):
    """Fused Reduction block for one batch element.

    xph_ref : (4, Hh, Wh, Cin) f32   phase-decomposed, 1-px-padded input
                                     (phase p = 2*(h%2) + (w%2); Hh = Ho+1)
    w1_ref  : (9, Cin,  Cout)  f32   conv1 per-tap weights, BN scale folded in
    wp_ref  : (4, Cin,  Cout)  f32   proj  per-tap weights, BN scale folded in
    w2_ref  : (9, Cout, Cout)  f32   conv2 per-tap weights, BN scale folded in
    b?_ref  : (1, Cout)        f32   folded BN bias (conv bias included)
    o_ref   : (Ho*Wo, Cout)          fused output (channels-last, flat spatial)
    x1p_ref : (Ho+2, Wo+2, Cout) f32 VMEM scratch: conv1 output + zero halo
    """
    _, Hh, Wh, Cin = xph_ref.shape
    Ho, Wo = Hh - 1, Wh - 1
    M = Ho * Wo
    Cout = w1_ref.shape[-1]

    # ---- conv1 (3x3, stride 2, pad 1): per-tap MXU accumulation -------------
    # Tap (i, j) of the stride-2 conv reads phase (i%2, j%2) at offset
    # (i//2, j//2): a unit-stride static window of the phase image.
    acc1 = jnp.zeros((M, Cout), jnp.float32)
    for i in range(3):
        for j in range(3):
            p = (i % 2) * 2 + (j % 2)
            di, dj = i // 2, j // 2
            xs = xph_ref[p, di:di + Ho, dj:dj + Wo, :].reshape(M, Cin)
            acc1 = acc1 + jnp.dot(xs, w1_ref[i * 3 + j],
                                  preferred_element_type=jnp.float32)
    x1 = jnp.maximum(acc1 + b1_ref[...], 0.0)            # (M, Cout)

    # ---- proj (2x2, stride 2, pad 0): same phase images, shifted taps -------
    # Unpadded x[2ho+i, 2wo+j] == xpad[2ho+i+1, 2wo+j+1] -> phase ((i+1)%2, ...)
    accp = jnp.zeros((M, Cout), jnp.float32)
    for i in range(2):
        for j in range(2):
            p = ((i + 1) % 2) * 2 + ((j + 1) % 2)
            di, dj = (i + 1) // 2, (j + 1) // 2
            xs = xph_ref[p, di:di + Ho, dj:dj + Wo, :].reshape(M, Cin)
            accp = accp + jnp.dot(xs, wp_ref[i * 2 + j],
                                  preferred_element_type=jnp.float32)
    p_out = jnp.maximum(accp + bp_ref[...], 0.0)          # (M, Cout)

    # ---- conv2 (3x3, stride 1, pad 1): stage x1 in VMEM with a zero halo ----
    x1p_ref[...] = jnp.zeros(x1p_ref.shape, x1p_ref.dtype)
    x1p_ref[1:1 + Ho, 1:1 + Wo, :] = x1.reshape(Ho, Wo, Cout)

    acc2 = jnp.zeros((M, Cout), jnp.float32)
    for i in range(3):
        for j in range(3):
            xs = x1p_ref[i:i + Ho, j:j + Wo, :].reshape(M, Cout)
            acc2 = acc2 + jnp.dot(xs, w2_ref[i * 3 + j],
                                  preferred_element_type=jnp.float32)

    # ---- fused BN/ReLU epilogue + residual add -------------------------------
    y = jnp.maximum(acc2 + b2_ref[...], 0.0) + p_out
    o_ref[...] = y.astype(o_ref.dtype)


# ------------------------------- JAX glue ----------------------------------- #

def _fold_bn_into_weight(p, eps=1e-5):
    """Fold inference BN (running stats) into the conv weights/bias.

    Returns per-tap weights (kh*kw, Cin, Cout) with the BN scale absorbed,
    plus the folded bias (1, Cout)."""
    s = p["gamma"] / jnp.sqrt(p["var"] + eps)              # (Cout,)
    b = (p["cb"] - p["mean"]) * s + p["beta"]              # (Cout,)
    kh, kw, ci, co = p["w"].shape                          # HWIO
    w = (p["w"] * s).reshape(kh * kw, ci, co)              # scale folded in
    return w.astype(jnp.float32), b.reshape(1, co).astype(jnp.float32)


def reduction_forward(params, x_nchw):
    """Forward pass of `Reduction`. Input NCHW, output NCHW."""
    N, Cin, H, W = x_nchw.shape
    # For even H/W conv2(conv1(x)) and proj(x) have identical spatial size, so
    # the module's crop branch never triggers.
    assert H % 2 == 0 and W % 2 == 0, "even spatial sizes only"
    Ho, Wo = H // 2, W // 2
    Hh, Wh = Ho + 1, Wo + 1
    Cout = params["conv1"]["w"].shape[-1]

    # Host prep: 1-px pad (conv1's padding=1) + space-to-depth into the four
    # stride-2 phases.  O(input bytes); replaces the old 9x im2col expansion.
    x = x_nchw.astype(jnp.float32)
    xpad = jnp.pad(x, ((0, 0), (0, 0), (1, 1), (1, 1)))    # (N, Cin, H+2, W+2)
    xph = xpad.reshape(N, Cin, Hh, 2, Wh, 2)
    xph = jnp.transpose(xph, (0, 3, 5, 2, 4, 1))           # (N, 2, 2, Hh, Wh, Cin)
    xph = xph.reshape(N, 4, Hh, Wh, Cin)                   # phase p = 2*r + s

    w1, b1 = _fold_bn_into_weight(params["conv1"])
    wp, bp = _fold_bn_into_weight(params["proj"])
    w2, b2 = _fold_bn_into_weight(params["conv2"])

    M = Ho * Wo
    flops = 2 * N * M * (13 * Cin * Cout + 9 * Cout * Cout)
    bytes_accessed = int(xph.size * 4 + (w1.size + wp.size + w2.size) * 4
                         + 3 * Cout * 4 + N * M * Cout * 4)

    out_flat = pl.pallas_call(
        _reduction_kernel,
        out_shape=jax.ShapeDtypeStruct((N, M, Cout), jnp.float32),
        grid=(N,),
        in_specs=[
            # streamed per-batch phase-decomposed input
            pl.BlockSpec((None, 4, Hh, Wh, Cin), lambda n: (n, 0, 0, 0, 0)),
            # tiny resident weight / bias blocks (same block every grid step)
            pl.BlockSpec((9, Cin, Cout), lambda n: (0, 0, 0)),
            pl.BlockSpec((1, Cout), lambda n: (0, 0)),
            pl.BlockSpec((4, Cin, Cout), lambda n: (0, 0, 0)),
            pl.BlockSpec((1, Cout), lambda n: (0, 0)),
            pl.BlockSpec((9, Cout, Cout), lambda n: (0, 0, 0)),
            pl.BlockSpec((1, Cout), lambda n: (0, 0)),
        ],
        out_specs=pl.BlockSpec((None, M, Cout), lambda n: (n, 0, 0)),
        scratch_shapes=[pltpu.VMEM((Ho + 2, Wo + 2, Cout), jnp.float32)],
        compiler_params=pltpu.CompilerParams(
            dimension_semantics=("parallel",)),
        cost_estimate=pl.CostEstimate(
            flops=flops, transcendentals=0, bytes_accessed=bytes_accessed),
    )(xph, w1, b1, wp, bp, w2, b2)

    out = out_flat.reshape(N, Ho, Wo, Cout)
    return jnp.transpose(out, (0, 3, 1, 2))                # (N, Cout, Ho, Wo)


# ------------------------------ synthetic params ---------------------------- #

def _make_params(key, cin, cout):
    """Deterministic synthetic params for the three Conv+BN blocks (HWIO)."""
    def block(k, kh, kw, ci, co):
        ks = jax.random.split(k, 6)
        w = jax.random.normal(ks[0], (kh, kw, ci, co), jnp.float32) * 0.1
        cb = jax.random.normal(ks[1], (co,), jnp.float32) * 0.1
        gamma = jax.random.uniform(ks[2], (co,), jnp.float32, 0.5, 1.5)
        beta = jax.random.normal(ks[3], (co,), jnp.float32) * 0.1
        mean = jax.random.normal(ks[4], (co,), jnp.float32) * 0.1
        var = jax.random.uniform(ks[5], (co,), jnp.float32, 0.5, 1.5)
        return dict(w=w, cb=cb, gamma=gamma, beta=beta, mean=mean, var=var)

    k1, k2, k3 = jax.random.split(key, 3)
    return dict(
        conv1=block(k1, 3, 3, cin, cout),
        conv2=block(k2, 3, 3, cout, cout),
        proj=block(k3, 2, 2, cin, cout),
    )


# ------------------------------ reference ----------------------------------- #

def _reference_forward(params, x_nchw):
    """Pure-JAX (lax.conv, f32) reference with the same folded-BN semantics."""
    x = jnp.transpose(x_nchw, (0, 2, 3, 1)).astype(jnp.float32)

    def cbr(p, x_in, stride, pad):
        y = jax.lax.conv_general_dilated(
            x_in, p["w"], (stride, stride), [(pad, pad), (pad, pad)],
            dimension_numbers=("NHWC", "HWIO", "NHWC"))
        s = p["gamma"] / jnp.sqrt(p["var"] + 1e-5)
        b = (p["cb"] - p["mean"]) * s + p["beta"]
        return jnp.maximum(y * s + b, 0.0)

    p_out = cbr(params["proj"], x, 2, 0)
    x1 = cbr(params["conv1"], x, 2, 1)
    x2 = cbr(params["conv2"], x1, 1, 1)
    if x2.shape[1] > p_out.shape[1]:
        x2 = x2[:, :-1, :-1, :]
    elif x2.shape[1] < p_out.shape[1]:
        p_out = p_out[:, :-1, :-1, :]
    return jnp.transpose(x2 + p_out, (0, 3, 1, 2))


# --------------------------------- main -------------------------------------- #

if __name__ == "__main__":
    in_channels, out_channels = 4, 8
    N, H, W = 2, 16, 16

    key = jax.random.PRNGKey(0)
    kx, kp = jax.random.split(key)
    x = jax.random.normal(kx, (N, in_channels, H, W), jnp.float32)  # NCHW
    params = _make_params(kp, in_channels, out_channels)

    fwd = jax.jit(functools.partial(reduction_forward, params))
    out = jax.block_until_ready(fwd(x))

    ref = jax.block_until_ready(_reference_forward(params, x))
    np.testing.assert_allclose(np.asarray(out), np.asarray(ref),
                               atol=2e-2, rtol=2e-2)
    assert out.shape == (N, out_channels, H // 2, W // 2)

    print("KERNEL_OK")
</pallas_src>

<mosaic_0001>
module attributes {stable_mosaic.version = 11 : i64} {
  func.func @_reduction_kernel(%arg0: i32, %arg1: memref<1x4x9x9x4xf32, #tpu.memory_space<vmem>>, %arg2: memref<9x4x8xf32, #tpu.memory_space<vmem>>, %arg3: memref<1x8xf32, #tpu.memory_space<vmem>>, %arg4: memref<4x4x8xf32, #tpu.memory_space<vmem>>, %arg5: memref<1x8xf32, #tpu.memory_space<vmem>>, %arg6: memref<9x8x8xf32, #tpu.memory_space<vmem>>, %arg7: memref<1x8xf32, #tpu.memory_space<vmem>>, %arg8: memref<1x64x8xf32, #tpu.memory_space<vmem>>, %arg9: memref<10x10x8xf32, #tpu.memory_space<vmem>>) attributes {dimension_semantics = [#tpu.dimension_semantics<parallel>], iteration_bounds = array<i64: 2>, scalar_prefetch = 0 : i64, scratch_operands = 1 : i64, tpu.core_type = #tpu.core_type<tc>, window_params = [{transform_indices = @transform_0, window_bounds = array<i64: 1, 4, 9, 9, 4>}, {pipeline_mode = #tpu.pipeline_mode<synchronous>, transform_indices = @transform_1, window_bounds = array<i64: 9, 4, 8>}, {pipeline_mode = #tpu.pipeline_mode<synchronous>, transform_indices = @transform_2, window_bounds = array<i64: 1, 8>}, {pipeline_mode = #tpu.pipeline_mode<synchronous>, transform_indices = @transform_3, window_bounds = array<i64: 4, 4, 8>}, {pipeline_mode = #tpu.pipeline_mode<synchronous>, transform_indices = @transform_4, window_bounds = array<i64: 1, 8>}, {pipeline_mode = #tpu.pipeline_mode<synchronous>, transform_indices = @transform_5, window_bounds = array<i64: 9, 8, 8>}, {pipeline_mode = #tpu.pipeline_mode<synchronous>, transform_indices = @transform_6, window_bounds = array<i64: 1, 8>}, {transform_indices = @transform_7, window_bounds = array<i64: 1, 64, 8>}]} {
    %cst = arith.constant 0.000000e+00 : f32
    %0 = vector.broadcast %cst : f32 to vector<64x8xf32>
    %c0 = arith.constant 0 : index
    %c0_0 = arith.constant 0 : index
    %c0_1 = arith.constant 0 : index
    %c0_2 = arith.constant 0 : index
    %c0_3 = arith.constant 0 : index
    %1 = vector.load %arg1[%c0, %c0_0, %c0_1, %c0_2, %c0_3] : memref<1x4x9x9x4xf32, #tpu.memory_space<vmem>>, vector<1x1x8x8x4xf32>
    %2 = vector.shape_cast %1 : vector<1x1x8x8x4xf32> to vector<8x8x4xf32>
    %3 = vector.shape_cast %2 : vector<8x8x4xf32> to vector<64x4xf32>
    %c0_4 = arith.constant 0 : index
    %c0_5 = arith.constant 0 : index
    %c0_6 = arith.constant 0 : index
    %4 = vector.load %arg2[%c0_4, %c0_5, %c0_6] : memref<9x4x8xf32, #tpu.memory_space<vmem>>, vector<1x4x8xf32>
    %5 = vector.shape_cast %4 : vector<1x4x8xf32> to vector<4x8xf32>
    %cst_7 = arith.constant dense<0.000000e+00> : vector<64x8xf32>
    %6 = tpu.matmul %3, %5, %cst_7 {dimension_numbers = #tpu.dot_dimension_numbers<[1], [0], [0], [1], [0, 0, 1, 1], [], []>} : vector<64x4xf32>, vector<4x8xf32>, vector<64x8xf32> -> vector<64x8xf32>
    %7 = arith.addf %0, %6 : vector<64x8xf32>
    %c0_8 = arith.constant 0 : index
    %c1 = arith.constant 1 : index
    %c0_9 = arith.constant 0 : index
    %c0_10 = arith.constant 0 : index
    %c0_11 = arith.constant 0 : index
    %8 = vector.load %arg1[%c0_8, %c1, %c0_9, %c0_10, %c0_11] : memref<1x4x9x9x4xf32, #tpu.memory_space<vmem>>, vector<1x1x8x8x4xf32>
    %9 = vector.shape_cast %8 : vector<1x1x8x8x4xf32> to vector<8x8x4xf32>
    %10 = vector.shape_cast %9 : vector<8x8x4xf32> to vector<64x4xf32>
    %c1_12 = arith.constant 1 : index
    %c0_13 = arith.constant 0 : index
    %c0_14 = arith.constant 0 : index
    %11 = vector.load %arg2[%c1_12, %c0_13, %c0_14] : memref<9x4x8xf32, #tpu.memory_space<vmem>>, vector<1x4x8xf32>
    %12 = vector.shape_cast %11 : vector<1x4x8xf32> to vector<4x8xf32>
    %cst_15 = arith.constant dense<0.000000e+00> : vector<64x8xf32>
    %13 = tpu.matmul %10, %12, %cst_15 {dimension_numbers = #tpu.dot_dimension_numbers<[1], [0], [0], [1], [0, 0, 1, 1], [], []>} : vector<64x4xf32>, vector<4x8xf32>, vector<64x8xf32> -> vector<64x8xf32>
    %14 = arith.addf %7, %13 : vector<64x8xf32>
    %c0_16 = arith.constant 0 : index
    %c0_17 = arith.constant 0 : index
    %c0_18 = arith.constant 0 : index
    %c1_19 = arith.constant 1 : index
    %c0_20 = arith.constant 0 : index
    %15 = vector.load %arg1[%c0_16, %c0_17, %c0_18, %c1_19, %c0_20] : memref<1x4x9x9x4xf32, #tpu.memory_space<vmem>>, vector<1x1x8x8x4xf32>
    %16 = vector.shape_cast %15 : vector<1x1x8x8x4xf32> to vector<8x8x4xf32>
    %17 = vector.shape_cast %16 : vector<8x8x4xf32> to vector<64x4xf32>
    %c2 = arith.constant 2 : index
    %c0_21 = arith.constant 0 : index
    %c0_22 = arith.constant 0 : index
    %18 = vector.load %arg2[%c2, %c0_21, %c0_22] : memref<9x4x8xf32, #tpu.memory_space<vmem>>, vector<1x4x8xf32>
    %19 = vector.shape_cast %18 : vector<1x4x8xf32> to vector<4x8xf32>
    %cst_23 = arith.constant dense<0.000000e+00> : vector<64x8xf32>
    %20 = tpu.matmul %17, %19, %cst_23 {dimension_numbers = #tpu.dot_dimension_numbers<[1], [0], [0], [1], [0, 0, 1, 1], [], []>} : vector<64x4xf32>, vector<4x8xf32>, vector<64x8xf32> -> vector<64x8xf32>
    %21 = arith.addf %14, %20 : vector<64x8xf32>
    %c0_24 = arith.constant 0 : index
    %c2_25 = arith.constant 2 : index
    %c0_26 = arith.constant 0 : index
    %c0_27 = arith.constant 0 : index
    %c0_28 = arith.constant 0 : index
    %22 = vector.load %arg1[%c0_24, %c2_25, %c0_26, %c0_27, %c0_28] : memref<1x4x9x9x4xf32, #tpu.memory_space<vmem>>, vector<1x1x8x8x4xf32>
    %23 = vector.shape_cast %22 : vector<1x1x8x8x4xf32> to vector<8x8x4xf32>
    %24 = vector.shape_cast %23 : vector<8x8x4xf32> to vector<64x4xf32>
    %c3 = arith.constant 3 : index
    %c0_29 = arith.constant 0 : index
    %c0_30 = arith.constant 0 : index
    %25 = vector.load %arg2[%c3, %c0_29, %c0_30] : memref<9x4x8xf32, #tpu.memory_space<vmem>>, vector<1x4x8xf32>
    %26 = vector.shape_cast %25 : vector<1x4x8xf32> to vector<4x8xf32>
    %cst_31 = arith.constant dense<0.000000e+00> : vector<64x8xf32>
    %27 = tpu.matmul %24, %26, %cst_31 {dimension_numbers = #tpu.dot_dimension_numbers<[1], [0], [0], [1], [0, 0, 1, 1], [], []>} : vector<64x4xf32>, vector<4x8xf32>, vector<64x8xf32> -> vector<64x8xf32>
    %28 = arith.addf %21, %27 : vector<64x8xf32>
    %c0_32 = arith.constant 0 : index
    %c3_33 = arith.constant 3 : index
    %c0_34 = arith.constant 0 : index
    %c0_35 = arith.constant 0 : index
    %c0_36 = arith.constant 0 : index
    %29 = vector.load %arg1[%c0_32, %c3_33, %c0_34, %c0_35, %c0_36] : memref<1x4x9x9x4xf32, #tpu.memory_space<vmem>>, vector<1x1x8x8x4xf32>
    %30 = vector.shape_cast %29 : vector<1x1x8x8x4xf32> to vector<8x8x4xf32>
    %31 = vector.shape_cast %30 : vector<8x8x4xf32> to vector<64x4xf32>
    %c4 = arith.constant 4 : index
    %c0_37 = arith.constant 0 : index
    %c0_38 = arith.constant 0 : index
    %32 = vector.load %arg2[%c4, %c0_37, %c0_38] : memref<9x4x8xf32, #tpu.memory_space<vmem>>, vector<1x4x8xf32>
    %33 = vector.shape_cast %32 : vector<1x4x8xf32> to vector<4x8xf32>
    %cst_39 = arith.constant dense<0.000000e+00> : vector<64x8xf32>
    %34 = tpu.matmul %31, %33, %cst_39 {dimension_numbers = #tpu.dot_dimension_numbers<[1], [0], [0], [1], [0, 0, 1, 1], [], []>} : vector<64x4xf32>, vector<4x8xf32>, vector<64x8xf32> -> vector<64x8xf32>
    %35 = arith.addf %28, %34 : vector<64x8xf32>
    %c0_40 = arith.constant 0 : index
    %c2_41 = arith.constant 2 : index
    %c0_42 = arith.constant 0 : index
    %c1_43 = arith.constant 1 : index
    %c0_44 = arith.constant 0 : index
    %36 = vector.load %arg1[%c0_40, %c2_41, %c0_42, %c1_43, %c0_44] : memref<1x4x9x9x4xf32, #tpu.memory_space<vmem>>, vector<1x1x8x8x4xf32>
    %37 = vector.shape_cast %36 : vector<1x1x8x8x4xf32> to vector<8x8x4xf32>
    %38 = vector.shape_cast %37 : vector<8x8x4xf32> to vector<64x4xf32>
    %c5 = arith.constant 5 : index
    %c0_45 = arith.constant 0 : index
    %c0_46 = arith.constant 0 : index
    %39 = vector.load %arg2[%c5, %c0_45, %c0_46] : memref<9x4x8xf32, #tpu.memory_space<vmem>>, vector<1x4x8xf32>
    %40 = vector.shape_cast %39 : vector<1x4x8xf32> to vector<4x8xf32>
    %cst_47 = arith.constant dense<0.000000e+00> : vector<64x8xf32>
    %41 = tpu.matmul %38, %40, %cst_47 {dimension_numbers = #tpu.dot_dimension_numbers<[1], [0], [0], [1], [0, 0, 1, 1], [], []>} : vector<64x4xf32>, vector<4x8xf32>, vector<64x8xf32> -> vector<64x8xf32>
    %42 = arith.addf %35, %41 : vector<64x8xf32>
    %c0_48 = arith.constant 0 : index
    %c0_49 = arith.constant 0 : index
    %c1_50 = arith.constant 1 : index
    %c0_51 = arith.constant 0 : index
    %c0_52 = arith.constant 0 : index
    %43 = vector.load %arg1[%c0_48, %c0_49, %c1_50, %c0_51, %c0_52] : memref<1x4x9x9x4xf32, #tpu.memory_space<vmem>>, vector<1x1x8x8x4xf32>
    %44 = vector.shape_cast %43 : vector<1x1x8x8x4xf32> to vector<8x8x4xf32>
    %45 = vector.shape_cast %44 : vector<8x8x4xf32> to vector<64x4xf32>
    %c6 = arith.constant 6 : index
    %c0_53 = arith.constant 0 : index
    %c0_54 = arith.constant 0 : index
    %46 = vector.load %arg2[%c6, %c0_53, %c0_54] : memref<9x4x8xf32, #tpu.memory_space<vmem>>, vector<1x4x8xf32>
    %47 = vector.shape_cast %46 : vector<1x4x8xf32> to vector<4x8xf32>
    %cst_55 = arith.constant dense<0.000000e+00> : vector<64x8xf32>
    %48 = tpu.matmul %45, %47, %cst_55 {dimension_numbers = #tpu.dot_dimension_numbers<[1], [0], [0], [1], [0, 0, 1, 1], [], []>} : vector<64x4xf32>, vector<4x8xf32>, vector<64x8xf32> -> vector<64x8xf32>
    %49 = arith.addf %42, %48 : vector<64x8xf32>
    %c0_56 = arith.constant 0 : index
    %c1_57 = arith.constant 1 : index
    %c1_58 = arith.constant 1 : index
    %c0_59 = arith.constant 0 : index
    %c0_60 = arith.constant 0 : index
    %50 = vector.load %arg1[%c0_56, %c1_57, %c1_58, %c0_59, %c0_60] : memref<1x4x9x9x4xf32, #tpu.memory_space<vmem>>, vector<1x1x8x8x4xf32>
    %51 = vector.shape_cast %50 : vector<1x1x8x8x4xf32> to vector<8x8x4xf32>
    %52 = vector.shape_cast %51 : vector<8x8x4xf32> to vector<64x4xf32>
    %c7 = arith.constant 7 : index
    %c0_61 = arith.constant 0 : index
    %c0_62 = arith.constant 0 : index
    %53 = vector.load %arg2[%c7, %c0_61, %c0_62] : memref<9x4x8xf32, #tpu.memory_space<vmem>>, vector<1x4x8xf32>
    %54 = vector.shape_cast %53 : vector<1x4x8xf32> to vector<4x8xf32>
    %cst_63 = arith.constant dense<0.000000e+00> : vector<64x8xf32>
    %55 = tpu.matmul %52, %54, %cst_63 {dimension_numbers = #tpu.dot_dimension_numbers<[1], [0], [0], [1], [0, 0, 1, 1], [], []>} : vector<64x4xf32>, vector<4x8xf32>, vector<64x8xf32> -> vector<64x8xf32>
    %56 = arith.addf %49, %55 : vector<64x8xf32>
    %c0_64 = arith.constant 0 : index
    %c0_65 = arith.constant 0 : index
    %c1_66 = arith.constant 1 : index
    %c1_67 = arith.constant 1 : index
    %c0_68 = arith.constant 0 : index
    %57 = vector.load %arg1[%c0_64, %c0_65, %c1_66, %c1_67, %c0_68] : memref<1x4x9x9x4xf32, #tpu.memory_space<vmem>>, vector<1x1x8x8x4xf32>
    %58 = vector.shape_cast %57 : vector<1x1x8x8x4xf32> to vector<8x8x4xf32>
    %59 = vector.shape_cast %58 : vector<8x8x4xf32> to vector<64x4xf32>
    %c8 = arith.constant 8 : index
    %c0_69 = arith.constant 0 : index
    %c0_70 = arith.constant 0 : index
    %60 = vector.load %arg2[%c8, %c0_69, %c0_70] : memref<9x4x8xf32, #tpu.memory_space<vmem>>, vector<1x4x8xf32>
    %61 = vector.shape_cast %60 : vector<1x4x8xf32> to vector<4x8xf32>
    %cst_71 = arith.constant dense<0.000000e+00> : vector<64x8xf32>
    %62 = tpu.matmul %59, %61, %cst_71 {dimension_numbers = #tpu.dot_dimension_numbers<[1], [0], [0], [1], [0, 0, 1, 1], [], []>} : vector<64x4xf32>, vector<4x8xf32>, vector<64x8xf32> -> vector<64x8xf32>
    %63 = arith.addf %56, %62 : vector<64x8xf32>
    %c0_72 = arith.constant 0 : index
    %c0_73 = arith.constant 0 : index
    %64 = vector.load %arg3[%c0_72, %c0_73] : memref<1x8xf32, #tpu.memory_space<vmem>>, vector<1x8xf32>
    %65 = vector.broadcast %64 : vector<1x8xf32> to vector<64x8xf32>
    %66 = arith.addf %63, %65 : vector<64x8xf32>
    %cst_74 = arith.constant 0.000000e+00 : f32
    %67 = vector.broadcast %cst_74 : f32 to vector<64x8xf32>
    %68 = arith.maximumf %66, %67 : vector<64x8xf32>
    %cst_75 = arith.constant 0.000000e+00 : f32
    %69 = vector.broadcast %cst_75 : f32 to vector<64x8xf32>
    %c0_76 = arith.constant 0 : index
    %c3_77 = arith.constant 3 : index
    %c0_78 = arith.constant 0 : index
    %c0_79 = arith.constant 0 : index
    %c0_80 = arith.constant 0 : index
    %70 = vector.load %arg1[%c0_76, %c3_77, %c0_78, %c0_79, %c0_80] : memref<1x4x9x9x4xf32, #tpu.memory_space<vmem>>, vector<1x1x8x8x4xf32>
    %71 = vector.shape_cast %70 : vector<1x1x8x8x4xf32> to vector<8x8x4xf32>
    %72 = vector.shape_cast %71 : vector<8x8x4xf32> to vector<64x4xf32>
    %c0_81 = arith.constant 0 : index
    %c0_82 = arith.constant 0 : index
    %c0_83 = arith.constant 0 : index
    %73 = vector.load %arg4[%c0_81, %c0_82, %c0_83] : memref<4x4x8xf32, #tpu.memory_space<vmem>>, vector<1x4x8xf32>
    %74 = vector.shape_cast %73 : vector<1x4x8xf32> to vector<4x8xf32>
    %cst_84 = arith.constant dense<0.000000e+00> : vector<64x8xf32>
    %75 = tpu.matmul %72, %74, %cst_84 {dimension_numbers = #tpu.dot_dimension_numbers<[1], [0], [0], [1], [0, 0, 1, 1], [], []>} : vector<64x4xf32>, vector<4x8xf32>, vector<64x8xf32> -> vector<64x8xf32>
    %76 = arith.addf %69, %75 : vector<64x8xf32>
    %c0_85 = arith.constant 0 : index
    %c2_86 = arith.constant 2 : index
    %c0_87 = arith.constant 0 : index
    %c1_88 = arith.constant 1 : index
    %c0_89 = arith.constant 0 : index
    %77 = vector.load %arg1[%c0_85, %c2_86, %c0_87, %c1_88, %c0_89] : memref<1x4x9x9x4xf32, #tpu.memory_space<vmem>>, vector<1x1x8x8x4xf32>
    %78 = vector.shape_cast %77 : vector<1x1x8x8x4xf32> to vector<8x8x4xf32>
    %79 = vector.shape_cast %78 : vector<8x8x4xf32> to vector<64x4xf32>
    %c1_90 = arith.constant 1 : index
    %c0_91 = arith.constant 0 : index
    %c0_92 = arith.constant 0 : index
    %80 = vector.load %arg4[%c1_90, %c0_91, %c0_92] : memref<4x4x8xf32, #tpu.memory_space<vmem>>, vector<1x4x8xf32>
    %81 = vector.shape_cast %80 : vector<1x4x8xf32> to vector<4x8xf32>
    %cst_93 = arith.constant dense<0.000000e+00> : vector<64x8xf32>
    %82 = tpu.matmul %79, %81, %cst_93 {dimension_numbers = #tpu.dot_dimension_numbers<[1], [0], [0], [1], [0, 0, 1, 1], [], []>} : vector<64x4xf32>, vector<4x8xf32>, vector<64x8xf32> -> vector<64x8xf32>
    %83 = arith.addf %76, %82 : vector<64x8xf32>
    %c0_94 = arith.constant 0 : index
    %c1_95 = arith.constant 1 : index
    %c1_96 = arith.constant 1 : index
    %c0_97 = arith.constant 0 : index
    %c0_98 = arith.constant 0 : index
    %84 = vector.load %arg1[%c0_94, %c1_95, %c1_96, %c0_97, %c0_98] : memref<1x4x9x9x4xf32, #tpu.memory_space<vmem>>, vector<1x1x8x8x4xf32>
    %85 = vector.shape_cast %84 : vector<1x1x8x8x4xf32> to vector<8x8x4xf32>
    %86 = vector.shape_cast %85 : vector<8x8x4xf32> to vector<64x4xf32>
    %c2_99 = arith.constant 2 : index
    %c0_100 = arith.constant 0 : index
    %c0_101 = arith.constant 0 : index
    %87 = vector.load %arg4[%c2_99, %c0_100, %c0_101] : memref<4x4x8xf32, #tpu.memory_space<vmem>>, vector<1x4x8xf32>
    %88 = vector.shape_cast %87 : vector<1x4x8xf32> to vector<4x8xf32>
    %cst_102 = arith.constant dense<0.000000e+00> : vector<64x8xf32>
    %89 = tpu.matmul %86, %88, %cst_102 {dimension_numbers = #tpu.dot_dimension_numbers<[1], [0], [0], [1], [0, 0, 1, 1], [], []>} : vector<64x4xf32>, vector<4x8xf32>, vector<64x8xf32> -> vector<64x8xf32>
    %90 = arith.addf %83, %89 : vector<64x8xf32>
    %c0_103 = arith.constant 0 : index
    %c0_104 = arith.constant 0 : index
    %c1_105 = arith.constant 1 : index
    %c1_106 = arith.constant 1 : index
    %c0_107 = arith.constant 0 : index
    %91 = vector.load %arg1[%c0_103, %c0_104, %c1_105, %c1_106, %c0_107] : memref<1x4x9x9x4xf32, #tpu.memory_space<vmem>>, vector<1x1x8x8x4xf32>
    %92 = vector.shape_cast %91 : vector<1x1x8x8x4xf32> to vector<8x8x4xf32>
    %93 = vector.shape_cast %92 : vector<8x8x4xf32> to vector<64x4xf32>
    %c3_108 = arith.constant 3 : index
    %c0_109 = arith.constant 0 : index
    %c0_110 = arith.constant 0 : index
    %94 = vector.load %arg4[%c3_108, %c0_109, %c0_110] : memref<4x4x8xf32, #tpu.memory_space<vmem>>, vector<1x4x8xf32>
    %95 = vector.shape_cast %94 : vector<1x4x8xf32> to vector<4x8xf32>
    %cst_111 = arith.constant dense<0.000000e+00> : vector<64x8xf32>
    %96 = tpu.matmul %93, %95, %cst_111 {dimension_numbers = #tpu.dot_dimension_numbers<[1], [0], [0], [1], [0, 0, 1, 1], [], []>} : vector<64x4xf32>, vector<4x8xf32>, vector<64x8xf32> -> vector<64x8xf32>
    %97 = arith.addf %90, %96 : vector<64x8xf32>
    %c0_112 = arith.constant 0 : index
    %c0_113 = arith.constant 0 : index
    %98 = vector.load %arg5[%c0_112, %c0_113] : memref<1x8xf32, #tpu.memory_space<vmem>>, vector<1x8xf32>
    %99 = vector.broadcast %98 : vector<1x8xf32> to vector<64x8xf32>
    %100 = arith.addf %97, %99 : vector<64x8xf32>
    %cst_114 = arith.constant 0.000000e+00 : f32
    %101 = vector.broadcast %cst_114 : f32 to vector<64x8xf32>
    %102 = arith.maximumf %100, %101 : vector<64x8xf32>
    %cst_115 = arith.constant 0.000000e+00 : f32
    %103 = vector.broadcast %cst_115 : f32 to vector<10x10x8xf32>
    %c0_116 = arith.constant 0 : index
    %c0_117 = arith.constant 0 : index
    %c0_118 = arith.constant 0 : index
    %104 = vector.load %arg9[%c0_116, %c0_117, %c0_118] : memref<10x10x8xf32, #tpu.memory_space<vmem>>, vector<10x10x8xf32>
    tpu.vector_store %arg9[%c0_116, %c0_117, %c0_118], %103 {strides = array<i32>} : memref<10x10x8xf32, #tpu.memory_space<vmem>>, vector<10x10x8xf32>,
    %105 = vector.shape_cast %68 : vector<64x8xf32> to vector<8x8x8xf32>
    %c1_119 = arith.constant 1 : index
    %c1_120 = arith.constant 1 : index
    %c0_121 = arith.constant 0 : index
    %106 = vector.load %arg9[%c1_119, %c1_120, %c0_121] : memref<10x10x8xf32, #tpu.memory_space<vmem>>, vector<8x8x8xf32>
    tpu.vector_store %arg9[%c1_119, %c1_120, %c0_121], %105 {strides = array<i32>} : memref<10x10x8xf32, #tpu.memory_space<vmem>>, vector<8x8x8xf32>,
    %cst_122 = arith.constant 0.000000e+00 : f32
    %107 = vector.broadcast %cst_122 : f32 to vector<64x8xf32>
    %c0_123 = arith.constant 0 : index
    %c0_124 = arith.constant 0 : index
    %c0_125 = arith.constant 0 : index
    %108 = vector.load %arg9[%c0_123, %c0_124, %c0_125] : memref<10x10x8xf32, #tpu.memory_space<vmem>>, vector<8x8x8xf32>
    %109 = vector.shape_cast %108 : vector<8x8x8xf32> to vector<64x8xf32>
    %c0_126 = arith.constant 0 : index
    %c0_127 = arith.constant 0 : index
    %c0_128 = arith.constant 0 : index
    %110 = vector.load %arg6[%c0_126, %c0_127, %c0_128] : memref<9x8x8xf32, #tpu.memory_space<vmem>>, vector<1x8x8xf32>
    %111 = vector.shape_cast %110 : vector<1x8x8xf32> to vector<8x8xf32>
    %cst_129 = arith.constant dense<0.000000e+00> : vector<64x8xf32>
    %112 = tpu.matmul %109, %111, %cst_129 {dimension_numbers = #tpu.dot_dimension_numbers<[1], [0], [0], [1], [0, 0, 1, 1], [], []>} : vector<64x8xf32>, vector<8x8xf32>, vector<64x8xf32> -> vector<64x8xf32>
    %113 = arith.addf %107, %112 : vector<64x8xf32>
    %c0_130 = arith.constant 0 : index
    %c1_131 = arith.constant 1 : index
    %c0_132 = arith.constant 0 : index
    %114 = vector.load %arg9[%c0_130, %c1_131, %c0_132] : memref<10x10x8xf32, #tpu.memory_space<vmem>>, vector<8x8x8xf32>
    %115 = vector.shape_cast %114 : vector<8x8x8xf32> to vector<64x8xf32>
    %c1_133 = arith.constant 1 : index
    %c0_134 = arith.constant 0 : index
    %c0_135 = arith.constant 0 : index
    %116 = vector.load %arg6[%c1_133, %c0_134, %c0_135] : memref<9x8x8xf32, #tpu.memory_space<vmem>>, vector<1x8x8xf32>
    %117 = vector.shape_cast %116 : vector<1x8x8xf32> to vector<8x8xf32>
    %cst_136 = arith.constant dense<0.000000e+00> : vector<64x8xf32>
    %118 = tpu.matmul %115, %117, %cst_136 {dimension_numbers = #tpu.dot_dimension_numbers<[1], [0], [0], [1], [0, 0, 1, 1], [], []>} : vector<64x8xf32>, vector<8x8xf32>, vector<64x8xf32> -> vector<64x8xf32>
    %119 = arith.addf %113, %118 : vector<64x8xf32>
    %c0_137 = arith.constant 0 : index
    %c2_138 = arith.constant 2 : index
    %c0_139 = arith.constant 0 : index
    %120 = vector.load %arg9[%c0_137, %c2_138, %c0_139] : memref<10x10x8xf32, #tpu.memory_space<vmem>>, vector<8x8x8xf32>
    %121 = vector.shape_cast %120 : vector<8x8x8xf32> to vector<64x8xf32>
    %c2_140 = arith.constant 2 : index
    %c0_141 = arith.constant 0 : index
    %c0_142 = arith.constant 0 : index
    %122 = vector.load %arg6[%c2_140, %c0_141, %c0_142] : memref<9x8x8xf32, #tpu.memory_space<vmem>>, vector<1x8x8xf32>
    %123 = vector.shape_cast %122 : vector<1x8x8xf32> to vector<8x8xf32>
    %cst_143 = arith.constant dense<0.000000e+00> : vector<64x8xf32>
    %124 = tpu.matmul %121, %123, %cst_143 {dimension_numbers = #tpu.dot_dimension_numbers<[1], [0], [0], [1], [0, 0, 1, 1], [], []>} : vector<64x8xf32>, vector<8x8xf32>, vector<64x8xf32> -> vector<64x8xf32>
    %125 = arith.addf %119, %124 : vector<64x8xf32>
    %c1_144 = arith.constant 1 : index
    %c0_145 = arith.constant 0 : index
    %c0_146 = arith.constant 0 : index
    %126 = vector.load %arg9[%c1_144, %c0_145, %c0_146] : memref<10x10x8xf32, #tpu.memory_space<vmem>>, vector<8x8x8xf32>
    %127 = vector.shape_cast %126 : vector<8x8x8xf32> to vector<64x8xf32>
    %c3_147 = arith.constant 3 : index
    %c0_148 = arith.constant 0 : index
    %c0_149 = arith.constant 0 : index
    %128 = vector.load %arg6[%c3_147, %c0_148, %c0_149] : memref<9x8x8xf32, #tpu.memory_space<vmem>>, vector<1x8x8xf32>
    %129 = vector.shape_cast %128 : vector<1x8x8xf32> to vector<8x8xf32>
    %cst_150 = arith.constant dense<0.000000e+00> : vector<64x8xf32>
    %130 = tpu.matmul %127, %129, %cst_150 {dimension_numbers = #tpu.dot_dimension_numbers<[1], [0], [0], [1], [0, 0, 1, 1], [], []>} : vector<64x8xf32>, vector<8x8xf32>, vector<64x8xf32> -> vector<64x8xf32>
    %131 = arith.addf %125, %130 : vector<64x8xf32>
    %c1_151 = arith.constant 1 : index
    %c1_152 = arith.constant 1 : index
    %c0_153 = arith.constant 0 : index
    %132 = vector.load %arg9[%c1_151, %c1_152, %c0_153] : memref<10x10x8xf32, #tpu.memory_space<vmem>>, vector<8x8x8xf32>
    %133 = vector.shape_cast %132 : vector<8x8x8xf32> to vector<64x8xf32>
    %c4_154 = arith.constant 4 : index
    %c0_155 = arith.constant 0 : index
    %c0_156 = arith.constant 0 : index
    %134 = vector.load %arg6[%c4_154, %c0_155, %c0_156] : memref<9x8x8xf32, #tpu.memory_space<vmem>>, vector<1x8x8xf32>
    %135 = vector.shape_cast %134 : vector<1x8x8xf32> to vector<8x8xf32>
    %cst_157 = arith.constant dense<0.000000e+00> : vector<64x8xf32>
    %136 = tpu.matmul %133, %135, %cst_157 {dimension_numbers = #tpu.dot_dimension_numbers<[1], [0], [0], [1], [0, 0, 1, 1], [], []>} : vector<64x8xf32>, vector<8x8xf32>, vector<64x8xf32> -> vector<64x8xf32>
    %137 = arith.addf %131, %136 : vector<64x8xf32>
    %c1_158 = arith.constant 1 : index
    %c2_159 = arith.constant 2 : index
    %c0_160 = arith.constant 0 : index
    %138 = vector.load %arg9[%c1_158, %c2_159, %c0_160] : memref<10x10x8xf32, #tpu.memory_space<vmem>>, vector<8x8x8xf32>
    %139 = vector.shape_cast %138 : vector<8x8x8xf32> to vector<64x8xf32>
    %c5_161 = arith.constant 5 : index
    %c0_162 = arith.constant 0 : index
    %c0_163 = arith.constant 0 : index
    %140 = vector.load %arg6[%c5_161, %c0_162, %c0_163] : memref<9x8x8xf32, #tpu.memory_space<vmem>>, vector<1x8x8xf32>
    %141 = vector.shape_cast %140 : vector<1x8x8xf32> to vector<8x8xf32>
    %cst_164 = arith.constant dense<0.000000e+00> : vector<64x8xf32>
    %142 = tpu.matmul %139, %141, %cst_164 {dimension_numbers = #tpu.dot_dimension_numbers<[1], [0], [0], [1], [0, 0, 1, 1], [], []>} : vector<64x8xf32>, vector<8x8xf32>, vector<64x8xf32> -> vector<64x8xf32>
    %143 = arith.addf %137, %142 : vector<64x8xf32>
    %c2_165 = arith.constant 2 : index
    %c0_166 = arith.constant 0 : index
    %c0_167 = arith.constant 0 : index
    %144 = vector.load %arg9[%c2_165, %c0_166, %c0_167] : memref<10x10x8xf32, #tpu.memory_space<vmem>>, vector<8x8x8xf32>
    %145 = vector.shape_cast %144 : vector<8x8x8xf32> to vector<64x8xf32>
    %c6_168 = arith.constant 6 : index
    %c0_169 = arith.constant 0 : index
    %c0_170 = arith.constant 0 : index
    %146 = vector.load %arg6[%c6_168, %c0_169, %c0_170] : memref<9x8x8xf32, #tpu.memory_space<vmem>>, vector<1x8x8xf32>
    %147 = vector.shape_cast %146 : vector<1x8x8xf32> to vector<8x8xf32>
    %cst_171 = arith.constant dense<0.000000e+00> : vector<64x8xf32>
    %148 = tpu.matmul %145, %147, %cst_171 {dimension_numbers = #tpu.dot_dimension_numbers<[1], [0], [0], [1], [0, 0, 1, 1], [], []>} : vector<64x8xf32>, vector<8x8xf32>, vector<64x8xf32> -> vector<64x8xf32>
    %149 = arith.addf %143, %148 : vector<64x8xf32>
    %c2_172 = arith.constant 2 : index
    %c1_173 = arith.constant 1 : index
    %c0_174 = arith.constant 0 : index
    %150 = vector.load %arg9[%c2_172, %c1_173, %c0_174] : memref<10x10x8xf32, #tpu.memory_space<vmem>>, vector<8x8x8xf32>
    %151 = vector.shape_cast %150 : vector<8x8x8xf32> to vector<64x8xf32>
    %c7_175 = arith.constant 7 : index
    %c0_176 = arith.constant 0 : index
    %c0_177 = arith.constant 0 : index
    %152 = vector.load %arg6[%c7_175, %c0_176, %c0_177] : memref<9x8x8xf32, #tpu.memory_space<vmem>>, vector<1x8x8xf32>
    %153 = vector.shape_cast %152 : vector<1x8x8xf32> to vector<8x8xf32>
    %cst_178 = arith.constant dense<0.000000e+00> : vector<64x8xf32>
    %154 = tpu.matmul %151, %153, %cst_178 {dimension_numbers = #tpu.dot_dimension_numbers<[1], [0], [0], [1], [0, 0, 1, 1], [], []>} : vector<64x8xf32>, vector<8x8xf32>, vector<64x8xf32> -> vector<64x8xf32>
    %155 = arith.addf %149, %154 : vector<64x8xf32>
    %c2_179 = arith.constant 2 : index
    %c2_180 = arith.constant 2 : index
    %c0_181 = arith.constant 0 : index
    %156 = vector.load %arg9[%c2_179, %c2_180, %c0_181] : memref<10x10x8xf32, #tpu.memory_space<vmem>>, vector<8x8x8xf32>
    %157 = vector.shape_cast %156 : vector<8x8x8xf32> to vector<64x8xf32>
    %c8_182 = arith.constant 8 : index
    %c0_183 = arith.constant 0 : index
    %c0_184 = arith.constant 0 : index
    %158 = vector.load %arg6[%c8_182, %c0_183, %c0_184] : memref<9x8x8xf32, #tpu.memory_space<vmem>>, vector<1x8x8xf32>
    %159 = vector.shape_cast %158 : vector<1x8x8xf32> to vector<8x8xf32>
    %cst_185 = arith.constant dense<0.000000e+00> : vector<64x8xf32>
    %160 = tpu.matmul %157, %159, %cst_185 {dimension_numbers = #tpu.dot_dimension_numbers<[1], [0], [0], [1], [0, 0, 1, 1], [], []>} : vector<64x8xf32>, vector<8x8xf32>, vector<64x8xf32> -> vector<64x8xf32>
    %161 = arith.addf %155, %160 : vector<64x8xf32>
    %c0_186 = arith.constant 0 : index
    %c0_187 = arith.constant 0 : index
    %162 = vector.load %arg7[%c0_186, %c0_187] : memref<1x8xf32, #tpu.memory_space<vmem>>, vector<1x8xf32>
    %163 = vector.broadcast %162 : vector<1x8xf32> to vector<64x8xf32>
    %164 = arith.addf %161, %163 : vector<64x8xf32>
    %cst_188 = arith.constant 0.000000e+00 : f32
    %165 = vector.broadcast %cst_188 : f32 to vector<64x8xf32>
    %166 = arith.maximumf %164, %165 : vector<64x8xf32>
    %167 = arith.addf %166, %102 : vector<64x8xf32>
    %c0_189 = arith.constant 0 : index
    %c0_190 = arith.constant 0 : index
    %c0_191 = arith.constant 0 : index
    %168 = vector.load %arg8[%c0_189, %c0_190, %c0_191] : memref<1x64x8xf32, #tpu.memory_space<vmem>>, vector<1x64x8xf32>
    %169 = vector.shape_cast %168 : vector<1x64x8xf32> to vector<64x8xf32>
    %170 = vector.shape_cast %167 : vector<64x8xf32> to vector<1x64x8xf32>
    tpu.vector_store %arg8[%c0_189, %c0_190, %c0_191], %170 {strides = array<i32>} : memref<1x64x8xf32, #tpu.memory_space<vmem>>, vector<1x64x8xf32>,
    return
  }
  func.func @transform_0(%arg0: i32) -> (i32, i32, i32, i32, i32) {
    %c0_i32 = arith.constant 0 : i32
    %c0_i32_0 = arith.constant 0 : i32
    %c0_i32_1 = arith.constant 0 : i32
    %c0_i32_2 = arith.constant 0 : i32
    %c0_i32_3 = arith.constant 0 : i32
    return %arg0, %c0_i32, %c0_i32_0, %c0_i32_1, %c0_i32_2 : i32, i32, i32, i32, i32
  }
  func.func @transform_1(%arg0: i32) -> (i32, i32, i32) {
    %c0_i32 = arith.constant 0 : i32
    %c0_i32_0 = arith.constant 0 : i32
    %c0_i32_1 = arith.constant 0 : i32
    %c0_i32_2 = arith.constant 0 : i32
    return %c0_i32, %c0_i32_0, %c0_i32_1 : i32, i32, i32
  }
  func.func @transform_2(%arg0: i32) -> (i32, i32) {
    %c0_i32 = arith.constant 0 : i32
    %c0_i32_0 = arith.constant 0 : i32
    %c0_i32_1 = arith.constant 0 : i32
    return %c0_i32, %c0_i32_0 : i32, i32
  }
  func.func @transform_3(%arg0: i32) -> (i32, i32, i32) {
    %c0_i32 = arith.constant 0 : i32
    %c0_i32_0 = arith.constant 0 : i32
    %c0_i32_1 = arith.constant 0 : i32
    %c0_i32_2 = arith.constant 0 : i32
    return %c0_i32, %c0_i32_0, %c0_i32_1 : i32, i32, i32
  }
  func.func @transform_4(%arg0: i32) -> (i32, i32) {
    %c0_i32 = arith.constant 0 : i32
    %c0_i32_0 = arith.constant 0 : i32
    %c0_i32_1 = arith.constant 0 : i32
    return %c0_i32, %c0_i32_0 : i32, i32
  }
  func.func @transform_5(%arg0: i32) -> (i32, i32, i32) {
    %c0_i32 = arith.constant 0 : i32
    %c0_i32_0 = arith.constant 0 : i32
    %c0_i32_1 = arith.constant 0 : i32
    %c0_i32_2 = arith.constant 0 : i32
    return %c0_i32, %c0_i32_0, %c0_i32_1 : i32, i32, i32
  }
  func.func @transform_6(%arg0: i32) -> (i32, i32) {
    %c0_i32 = arith.constant 0 : i32
    %c0_i32_0 = arith.constant 0 : i32
    %c0_i32_1 = arith.constant 0 : i32
    return %c0_i32, %c0_i32_0 : i32, i32
  }
  func.func @transform_7(%arg0: i32) -> (i32, i32, i32) {
    %c0_i32 = arith.constant 0 : i32
    %c0_i32_0 = arith.constant 0 : i32
    %c0_i32_1 = arith.constant 0 : i32
    return %arg0, %c0_i32, %c0_i32_0 : i32, i32, i32
  }
}

</mosaic_0001>

<bundles_post_ra>
// kernel: reduction_forward.1
= control target key start
LH: loop header
LB: loop body
LE: loop exit
PB: predicated region body
PF: predicated region fallthrough
CT: control target
= control target key end

     0   :  { %s4547_s24 = smov 0   ;;  %s5200_s0 = inlined_call_operand.vmem [shape: f32[2,4,9,9,4], index: 0, kind: input, shape index: {}]   ;;  %s5201_s1 = inlined_call_operand.vmem [shape: f32[9,4,8], index: 1, kind: input, shape index: {}]   ;;  %s5202_s2 = inlined_call_operand.vmem [shape: f32[1,8], index: 2, kind: input, shape index: {}]   ;;  %s5203_s3 = inlined_call_operand.vmem [shape: f32[4,4,8], index: 3, kind: input, shape index: {}]   ;;  %s5204_s4 = inlined_call_operand.vmem [shape: f32[1,8], index: 4, kind: input, shape index: {}]   ;;  %s5205_s5 = inlined_call_operand.vmem [shape: f32[9,8,8], index: 5, kind: input, shape index: {}]   ;;  %s5206_s6 = inlined_call_operand.vmem [shape: f32[1,8], index: 6, kind: input, shape index: {}]   ;;  %s5207_s7 = inlined_call_operand.vmem [shape: f32[2,64,8], index: 7, kind: output, shape index: {}]  }
   0x1 LB: > { %s3552_s25 = sadd.s32 4294967295, %s4504_s24   ;;  %p3556_p0 = scmp.ge.s32.totalorder %s4504_s24, 1  ;;  %s4504_s24 = sphi %s4547_s24, %s17_s24  }
   0x2   : > { %p237_p1 = scmp.lt.s32.totalorder %s4504_s24, 3 }
   0x4   : > { %p238_p2 = pnand %p3556_p0, %p237_p1 }
   0x5   : > { %v3568_v0 = vld [vmem:[%s5201_s1 + $0x4] sm:$0xf] (!%p238_p2)  ;;  %vm324_vm0 = vcmask (!%p238_p2), 1043456   ;;  %p269_p3 = scmp.lt.s32.totalorder (!%p238_p2), %s3552_s25, 1  ;;  %v287_v1 = vld [vmem:[%s5201_s1] sm:$0xf] (!%p238_p2) }
   0x6   : > { %241 = sbr.rel (%p238_p2) target bundleno = 732 (0x2dc), region = 48  ;;  %4028 = vmatprep.subr.msk.mxu0 (!%p238_p2), %vm324_vm0, %v3568_v0  ;;  %vm299_vm1 = vcmask (!%p238_p2), 31744   ;;  %v3587_v5 = vld [vmem:[%s5201_s1 + $0x8] sm:$0xf] (!%p238_p2)  ;;  %v3605_v14 = vld [vmem:[%s5201_s1 + $0xc] sm:$0xf] (!%p238_p2) }
   0x7   : > { %4029 = vmatpush3.msk.msra.mxu0 (!%p238_p2), %vm324_vm0, %v3568_v0  ;;  %v3725_v15 = vld [vmem:[%s5203_s3 + $0x8] sm:$0xf] (!%p238_p2)  ;;  %v3735_v22 = vld [vmem:[%s5203_s3 + $0xc] sm:$0xf] (!%p238_p2)  ;;  %v3623_v26 = vld [vmem:[%s5201_s1 + $0x10] sm:$0xf] (!%p238_p2) }
   0x8   : > { %4042 = vmatprep.subr.msk.mxu0 (!%p238_p2), %vm324_vm0, %v287_v1  ;;  %4182 = vmatprep.subr.msk.mxu1 (!%p238_p2), %vm324_vm0, %v3725_v15  ;;  %v3746_v33 = vld [vmem:[%s5205_s5 + $0x8] sm:$0xff] (!%p238_p2)  ;;  %v3641_v37 = vld [vmem:[%s5201_s1 + $0x14] sm:$0xf] (!%p238_p2)  ;;  %v3659_v46 = vld [vmem:[%s5201_s1 + $0x18] sm:$0xf] (!%p238_p2)  ;;  %vm2120_vm2 = vcmask (!%p238_p2), 64512  }
   0x9   : > { %4183 = vmatpush3.msk.msra.mxu1 (!%p238_p2), %vm324_vm0, %v3725_v15  ;;  %v3677_v55 = vld [vmem:[%s5201_s1 + $0x1c] sm:$0xf] (!%p238_p2)  ;;  %v3695_v61 = vld [vmem:[%s5201_s1 + $0x20] sm:$0xf] (!%p238_p2)  ;;  %v3706_v63 = vld [vmem:[%s5203_s3 + $0x4] sm:$0xf] (!%p238_p2) }
   0xa   : > { %4196 = vmatprep.subr.msk.mxu1 (!%p238_p2), %vm324_vm0, %v3735_v22  ;;  %v1642_v0 = vld [vmem:[%s5203_s3] sm:$0xf] (!%p238_p2)  ;;  %vm2122_vm3 = vcmask (!%p238_p2), 58368  }
   0xd   : > { %s5209_s25 = smov (!%p269_p3, %s3552_s25), 1 }
   0xe   : > { %s4488_s30 = smul.u32 576, %s5209_s25  ;;  %s3829_s15 = sshll.u32 %s5209_s25, 6 }
   0xf   : > { %s5175_s18 = scalar_lea.vmem %s5207_s7, %s3829_s15 }
  0x10   : > { %s4570_s10 = scalar_lea.vmem %s5200_s0, %s4488_s30 }
  0x11   : > { %v3560_v2 = vld [vmem:[%s4570_s10 + $0x90] sm:$0xff]  ;;  %v4574_v3 = vld [vmem:[%s4570_s10 + $0xa0] sm:$0xff] }
  0x12   : > { %v4577_v4 = vld [vmem:[%s4570_s10 + $0xb0] sm:$0xff]  ;;  %4030 = vmatprep.mubr.msk.f32.mxu0 %vm299_vm1, %v3560_v2  ;;  %4184 = vmatprep.mubr.msk.f32.mxu1 %vm299_vm1, %v4574_v3  ;;  %v4591_v6 = vld [vmem:[%s4570_s10 + $0xc0] sm:$0xff] }
  0x13   : > { %4031 = vmatmul.mubr.msk.f32.vlgmr.msra.gmra.mrb[0].mxu0 %vm299_vm1, %v4574_v3  ;;  %v4594_v7 = vld [vmem:[%s4570_s10 + $0xd0] sm:$0xff]  ;;  %v4602_v8 = vld [vmem:[%s4570_s10 + $0xe0] sm:$0xff]  ;;  %4185 = vmatmul.mubr.msk.f32.vlgmr.msra.gmra.mrb[0].mxu1 %vm299_vm1, %v4577_v4 }
  0x14   : > { %4043 = vmatpush3.msk.msra.mxu0 %vm324_vm0, %v287_v1  ;;  %4033 = vmatprep.mubr.msk.f32.mxu0 %vm299_vm1, %v4577_v4  ;;  %v4605_v9 = vld [vmem:[%s4570_s10 + $0xf0] sm:$0xff]  ;;  %v4612_v10 = vld [vmem:[%s4570_s10 + $0x100] sm:$0xff]  ;;  %v4506_v1 = vmov 0.0  }
  0x15   : > { %4056 = vmatprep.subr.msk.mxu0 %vm324_vm0, %v3587_v5  ;;  %v279_v11 = vld [vmem:[%s4570_s10] sm:$0xff]  ;;  %v4619_v12 = vld [vmem:[%s4570_s10 + $0x10] sm:$0xff]  ;;  %4187 = vmatprep.mubr.msk.f32.mxu1 %vm299_vm1, %v4591_v6  ;;  %2126 = vst.msk [vmem:[#allocation2 + $0x20] sm:$0xff] %vm2120_vm2, %v4506_v1  ;;  %2121 = vst.msk [vmem:[#allocation2] sm:$0xff] %vm2120_vm2, %v4506_v1 }
  0x16   : > { %v4622_v13 = vld [vmem:[%s4570_s10 + $0x20] sm:$0xff]  ;;  %v4637_v16 = vld [vmem:[%s4570_s10 + $0x30] sm:$0xff]  ;;  %4197 = vmatpush3.msk.msra.mxu1 %vm324_vm0, %v3735_v22  ;;  %2127 = vst.msk [vmem:[#allocation2 + $0x28] sm:$0x3] %vm2122_vm3, %v4506_v1  ;;  %2123 = vst.msk [vmem:[#allocation2 + $0x8] sm:$0x3] %vm2122_vm3, %v4506_v1 }
  0x17   : > { %4034 = vmatmul.mubr.msk.f32.gmra.mrb[2].mxu0 %vm299_vm1, %v4591_v6  ;;  %v4640_v17 = vld [vmem:[%s4570_s10 + $0x40] sm:$0xff]  ;;  %v4653_v18 = vld [vmem:[%s4570_s10 + $0x50] sm:$0xff]  ;;  %4188 = vmatmul.mubr.msk.f32.gmra.mrb[2].mxu1 %vm299_vm1, %v4594_v7  ;;  %2124 = vst.msk [vmem:[#allocation2 + $0x10] sm:$0xff] %vm2120_vm2, %v4506_v1  ;;  %2128 = vst.msk [vmem:[#allocation2 + $0x30] sm:$0xff] %vm2120_vm2, %v4506_v1 }
  0x18   : > { %4036 = vmatprep.mubr.msk.f32.mxu0 %vm299_vm1, %v4594_v7  ;;  %v4656_v19 = vld [vmem:[%s4570_s10 + $0x60] sm:$0xff]  ;;  %4190 = vmatprep.mubr.msk.f32.mxu1 %vm299_vm1, %v4602_v8  ;;  %v4667_v20 = vld [vmem:[%s4570_s10 + $0x70] sm:$0xff]  ;;  %2125 = vst.msk [vmem:[#allocation2 + $0x18] sm:$0x3] %vm2122_vm3, %v4506_v1  ;;  %2129 = vst.msk [vmem:[#allocation2 + $0x38] sm:$0x3] %vm2122_vm3, %v4506_v1 }
  0x19   : > { %v565_v21 = vld [vmem:[%s4570_s10 + $0x1] sm:$0xff]  ;;  %v4681_v23 = vld [vmem:[%s4570_s10 + $0x11] sm:$0xff]  ;;  %4210 = vmatprep.subr.mxu1 %v3746_v33  ;;  %2130 = vst.msk [vmem:[#allocation2 + $0x40] sm:$0xff] %vm2120_vm2, %v4506_v1  ;;  %2132 = vst.msk [vmem:[#allocation2 + $0x50] sm:$0xff] %vm2120_vm2, %v4506_v1 }
  0x1a   : > { %v4685_v24 = vld [vmem:[%s4570_s10 + $0x21] sm:$0xff]  ;;  %v4688_v25 = vld [vmem:[%s4570_s10 + $0x110] sm:$0xff]  ;;  %2131 = vst.msk [vmem:[#allocation2 + $0x48] sm:$0x3] %vm2122_vm3, %v4506_v1  ;;  %2133 = vst.msk [vmem:[#allocation2 + $0x58] sm:$0x3] %vm2122_vm3, %v4506_v1 }
  0x1b   : > { %4037 = vmatmul.mubr.msk.f32.gmra.mrb[4].mxu0 %vm299_vm1, %v4602_v8  ;;  %4191 = vmatmul.mubr.msk.f32.gmra.mrb[4].mxu1 %vm299_vm1, %v4605_v9  ;;  %v4704_v27 = vld [vmem:[%s4570_s10 + $0x31] sm:$0xff]  ;;  %v4707_v28 = vld [vmem:[%s4570_s10 + $0x41] sm:$0xff]  ;;  %2134 = vst.msk [vmem:[#allocation2 + $0x60] sm:$0xff] %vm2120_vm2, %v4506_v1  ;;  %2136 = vst.msk [vmem:[#allocation2 + $0x70] sm:$0xff] %vm2120_vm2, %v4506_v1 }
  0x1c   : > { %4039 = vmatprep.mubr.msk.f32.mxu0 %vm299_vm1, %v4605_v9  ;;  %4193 = vmatprep.mubr.msk.f32.mxu1 %vm299_vm1, %v4612_v10  ;;  %v4719_v29 = vld [vmem:[%s4570_s10 + $0x51] sm:$0xff]  ;;  %v4722_v30 = vld [vmem:[%s4570_s10 + $0x61] sm:$0xff]  ;;  %2135 = vst.msk [vmem:[#allocation2 + $0x68] sm:$0x3] %vm2122_vm3, %v4506_v1  ;;  %2137 = vst.msk [vmem:[#allocation2 + $0x78] sm:$0x3] %vm2122_vm3, %v4506_v1 }
  0x1d   : > { %v4733_v31 = vld [vmem:[%s4570_s10 + $0x71] sm:$0xff]  ;;  %v3597_v32 = vld [vmem:[%s4570_s10 + $0x120] sm:$0xff]  ;;  %2138 = vst.msk [vmem:[#allocation2 + $0x80] sm:$0xff] %vm2120_vm2, %v4506_v1  ;;  %2140 = vst.msk [vmem:[#allocation2 + $0x90] sm:$0xff] %vm2120_vm2, %v4506_v1 }
  0x1e   : > { %v3598_v34 = vld [vmem:[%s4570_s10 + $0x130] sm:$0xff]  ;;  %v3599_v35 = vld [vmem:[%s4570_s10 + $0x140] sm:$0xff]  ;;  %2139 = vst.msk [vmem:[#allocation2 + $0x88] sm:$0x3] %vm2122_vm3, %v4506_v1  ;;  %2141 = vst.msk [vmem:[#allocation2 + $0x98] sm:$0x3] %vm2122_vm3, %v4506_v1 }
  0x1f   : > { %4040 = vmatmul.mubr.msk.f32.gmra.mrb[6].mxu0 %vm299_vm1, %v4612_v10  ;;  %4194 = vmatmul.mubr.msk.f32.gmra.mrb[6].mxu1 %vm299_vm1, %v4688_v25  ;;  %v4749_v36 = vld [vmem:[%s4570_s10 + $0x81] sm:$0xff]  ;;  %v3600_v38 = vld [vmem:[%s4570_s10 + $0x150] sm:$0xff] }
  0x20   : > { %4044 = vmatprep.mubr.msk.f32.mxu0 %vm299_vm1, %v279_v11  ;;  %4198 = vmatprep.mubr.msk.f32.mxu1 %vm299_vm1, %v4681_v23  ;;  %v3601_v39 = vld [vmem:[%s4570_s10 + $0x160] sm:$0xff]  ;;  %v3602_v40 = vld [vmem:[%s4570_s10 + $0x170] sm:$0xff] }
  0x21   : > { %v3603_v41 = vld [vmem:[%s4570_s10 + $0x180] sm:$0xff]  ;;  %v3604_v42 = vld [vmem:[%s4570_s10 + $0x190] sm:$0xff] }
  0x22   : > { %v4770_v43 = vld [vmem:[%s4570_s10 + $0x1b0] sm:$0xff]  ;;  %v4776_v44 = vld [vmem:[%s4570_s10 + $0x1c0] sm:$0xff] }
  0x23   : > { %4045 = vmatmul.mubr.msk.f32.vlgmr.msra.gmra.mrb[0].mxu0 %vm299_vm1, %v4619_v12  ;;  %4199 = vmatmul.mubr.msk.f32.vlgmr.msra.gmra.mrb[0].mxu1 %vm299_vm1, %v4685_v24  ;;  %v4779_v45 = vld [vmem:[%s4570_s10 + $0x1d0] sm:$0xff]  ;;  %v4790_v47 = vld [vmem:[%s4570_s10 + $0x1e0] sm:$0xff] }
  0x24   : > { %4057 = vmatpush3.msk.msra.mxu0 %vm324_vm0, %v3587_v5  ;;  %4047 = vmatprep.mubr.msk.f32.mxu0 %vm299_vm1, %v4622_v13  ;;  %v4793_v48 = vld [vmem:[%s4570_s10 + $0x1f0] sm:$0xff]  ;;  %v4801_v49 = vld [vmem:[%s4570_s10 + $0x200] sm:$0xff] }
  0x25   : > { %4070 = vmatprep.subr.msk.mxu0 %vm324_vm0, %v3605_v14  ;;  %4201 = vmatprep.mubr.msk.f32.mxu1 %vm299_vm1, %v4704_v27  ;;  %v4804_v50 = vld [vmem:[%s4570_s10 + $0x210] sm:$0xff]  ;;  %v4811_v51 = vld [vmem:[%s4570_s10 + $0x220] sm:$0xff] }
  0x26   : > { %4211 = vmatpush3.msra.mxu1 %v3746_v33  ;;  %v3633_v52 = vld [vmem:[%s4570_s10 + $0x121] sm:$0xff]  ;;  %v3634_v53 = vld [vmem:[%s4570_s10 + $0x131] sm:$0xff] }
  0x27   : > { %4048 = vmatmul.mubr.msk.f32.gmra.mrb[2].mxu0 %vm299_vm1, %v4637_v16  ;;  %4202 = vmatmul.mubr.msk.f32.gmra.mrb[2].mxu1 %vm299_vm1, %v4707_v28  ;;  %v3635_v54 = vld [vmem:[%s4570_s10 + $0x141] sm:$0xff]  ;;  %v3636_v56 = vld [vmem:[%s4570_s10 + $0x151] sm:$0xff] }
  0x28   : > { %4050 = vmatprep.mubr.msk.f32.mxu0 %vm299_vm1, %v4640_v17  ;;  %4204 = vmatprep.mubr.msk.f32.mxu1 %vm299_vm1, %v4719_v29  ;;  %v3637_v57 = vld [vmem:[%s4570_s10 + $0x161] sm:$0xff]  ;;  %v3638_v58 = vld [vmem:[%s4570_s10 + $0x171] sm:$0xff] }
  0x29   : > { %v3639_v59 = vld [vmem:[%s4570_s10 + $0x181] sm:$0xff]  ;;  %v3640_v60 = vld [vmem:[%s4570_s10 + $0x191] sm:$0xff] }
  0x2a   : > { %v3658_v62 = vld [vmem:[%s4570_s10 + $0x80] sm:$0xff] }
  0x2b   : > { %4051 = vmatmul.mubr.msk.f32.gmra.mrb[4].mxu0 %vm299_vm1, %v4653_v18  ;;  %4205 = vmatmul.mubr.msk.f32.gmra.mrb[4].mxu1 %vm299_vm1, %v4722_v30  ;;  %v2160_v2 = vld [vmem:[#allocation2 + $0x1] sm:$0xff] }
  0x2c   : > { %4053 = vmatprep.mubr.msk.f32.mxu0 %vm299_vm1, %v4656_v19  ;;  %4207 = vmatprep.mubr.msk.f32.mxu1 %vm299_vm1, %v4733_v31 }
  0x2f   : > { %4054 = vmatmul.mubr.msk.f32.gmra.mrb[6].mxu0 %vm299_vm1, %v4667_v20  ;;  %4208 = vmatmul.mubr.msk.f32.gmra.mrb[6].mxu1 %vm299_vm1, %v4749_v36 }
  0x30   : > { %4058 = vmatprep.mubr.msk.f32.mxu0 %vm299_vm1, %v565_v21  ;;  %4212 = vmatprep.mubr.msk.f32.mxu1 %vm2120_vm2, %v2160_v2 }
  0x33   : > { %4059 = vmatmul.mubr.msk.f32.vlgmr.msra.gmra.mrb[0].mxu0 %vm299_vm1, %v4681_v23 }
  0x34   : > { %4071 = vmatpush3.msk.msra.mxu0 %vm324_vm0, %v3605_v14  ;;  %4061 = vmatprep.mubr.msk.f32.mxu0 %vm299_vm1, %v4685_v24 }
  0x35   : > { %4084 = vmatprep.subr.msk.mxu0 %vm324_vm0, %v3623_v26 }
  0x37   : > { %4062 = vmatmul.mubr.msk.f32.gmra.mrb[2].mxu0 %vm299_vm1, %v4704_v27 }
  0x38   : > { %4064 = vmatprep.mubr.msk.f32.mxu0 %vm299_vm1, %v4707_v28 }
  0x3b   : > { %4065 = vmatmul.mubr.msk.f32.gmra.mrb[4].mxu0 %vm299_vm1, %v4719_v29 }
  0x3c   : > { %4067 = vmatprep.mubr.msk.f32.mxu0 %vm299_vm1, %v4722_v30 }
  0x3f   : > { %4068 = vmatmul.mubr.msk.f32.gmra.mrb[6].mxu0 %vm299_vm1, %v4733_v31 }
  0x40   : > { %4072 = vmatprep.mubr.msk.f32.mxu0 %vm299_vm1, %v3597_v32 }
  0x43   : > { %4073 = vmatmul.mubr.msk.f32.vlgmr.msra.gmra.mrb[0].mxu0 %vm299_vm1, %v3598_v34 }
  0x44   : > { %4085 = vmatpush3.msk.msra.mxu0 %vm324_vm0, %v3623_v26  ;;  %4075 = vmatprep.mubr.msk.f32.mxu0 %vm299_vm1, %v3599_v35 }
  0x45   : > { %4098 = vmatprep.subr.msk.mxu0 %vm324_vm0, %v3641_v37 }
  0x47   : > { %4076 = vmatmul.mubr.msk.f32.gmra.mrb[2].mxu0 %vm299_vm1, %v3600_v38 }
  0x48   : > { %4078 = vmatprep.mubr.msk.f32.mxu0 %vm299_vm1, %v3601_v39 }
  0x4b   : > { %4079 = vmatmul.mubr.msk.f32.gmra.mrb[4].mxu0 %vm299_vm1, %v3602_v40 }
  0x4c   : > { %4081 = vmatprep.mubr.msk.f32.mxu0 %vm299_vm1, %v3603_v41 }
  0x4f   : > { %4082 = vmatmul.mubr.msk.f32.gmra.mrb[6].mxu0 %vm299_vm1, %v3604_v42  ;;  %v3772_v42 = vld [vmem:[%s5205_s5 + $0x18] sm:$0xff] }
  0x50   : > { %4086 = vmatprep.mubr.msk.f32.mxu0 %vm299_vm1, %v4770_v43 }
  0x53   : > { %4087 = vmatmul.mubr.msk.f32.vlgmr.msra.gmra.mrb[0].mxu0 %vm299_vm1, %v4776_v44 }
  0x54   : > { %4099 = vmatpush3.msk.msra.mxu0 %vm324_vm0, %v3641_v37  ;;  %4089 = vmatprep.mubr.msk.f32.mxu0 %vm299_vm1, %v4779_v45 }
  0x55   : > { %4112 = vmatprep.subr.msk.mxu0 %vm324_vm0, %v3659_v46 }
  0x57   : > { %4090 = vmatmul.mubr.msk.f32.gmra.mrb[2].mxu0 %vm299_vm1, %v4790_v47 }
  0x58   : > { %4092 = vmatprep.mubr.msk.f32.mxu0 %vm299_vm1, %v4793_v48 }
  0x5b   : > { %4093 = vmatmul.mubr.msk.f32.gmra.mrb[4].mxu0 %vm299_vm1, %v4801_v49 }
  0x5c   : > { %4095 = vmatprep.mubr.msk.f32.mxu0 %vm299_vm1, %v4804_v50 }
  0x5f   : > { %4096 = vmatmul.mubr.msk.f32.gmra.mrb[6].mxu0 %vm299_vm1, %v4811_v51 }
  0x60   : > { %4100 = vmatprep.mubr.msk.f32.mxu0 %vm299_vm1, %v3633_v52 }
  0x63   : > { %4101 = vmatmul.mubr.msk.f32.vlgmr.msra.gmra.mrb[0].mxu0 %vm299_vm1, %v3634_v53 }
  0x64   : > { %4113 = vmatpush3.msk.msra.mxu0 %vm324_vm0, %v3659_v46  ;;  %4103 = vmatprep.mubr.msk.f32.mxu0 %vm299_vm1, %v3635_v54 }
  0x65   : > { %4126 = vmatprep.subr.msk.mxu0 %vm324_vm0, %v3677_v55 }
  0x67   : > { %4104 = vmatmul.mubr.msk.f32.gmra.mrb[2].mxu0 %vm299_vm1, %v3636_v56 }
  0x68   : > { %4106 = vmatprep.mubr.msk.f32.mxu0 %vm299_vm1, %v3637_v57 }
  0x6b   : > { %4107 = vmatmul.mubr.msk.f32.gmra.mrb[4].mxu0 %vm299_vm1, %v3638_v58 }
  0x6c   : > { %4109 = vmatprep.mubr.msk.f32.mxu0 %vm299_vm1, %v3639_v59 }
  0x6f   : > { %4110 = vmatmul.mubr.msk.f32.gmra.mrb[6].mxu0 %vm299_vm1, %v3640_v60 }
  0x70   : > { %4114 = vmatprep.mubr.msk.f32.mxu0 %vm299_vm1, %v4619_v12 }
  0x73   : > { %4115 = vmatmul.mubr.msk.f32.vlgmr.msra.gmra.mrb[0].mxu0 %vm299_vm1, %v4622_v13 }
  0x74   : > { %4127 = vmatpush3.msk.msra.mxu0 %vm324_vm0, %v3677_v55  ;;  %4117 = vmatprep.mubr.msk.f32.mxu0 %vm299_vm1, %v4637_v16 }
  0x75   : > { %4140 = vmatprep.subr.msk.mxu0 %vm324_vm0, %v3695_v61 }
  0x77   : > { %4118 = vmatmul.mubr.msk.f32.gmra.mrb[2].mxu0 %vm299_vm1, %v4640_v17 }
  0x78   : > { %4120 = vmatprep.mubr.msk.f32.mxu0 %vm299_vm1, %v4653_v18 }
  0x7b   : > { %4121 = vmatmul.mubr.msk.f32.gmra.mrb[4].mxu0 %vm299_vm1, %v4656_v19 }
  0x7c   : > { %4123 = vmatprep.mubr.msk.f32.mxu0 %vm299_vm1, %v4667_v20 }
  0x7f   : > { %4124 = vmatmul.mubr.msk.f32.gmra.mrb[6].mxu0 %vm299_vm1, %v3658_v62 }
  0x80   : > { %4128 = vmatprep.mubr.msk.f32.mxu0 %vm299_vm1, %v4574_v3  ;;  %v2159_v3 = vld [vmem:[%s5205_s5] sm:$0xff] }
  0x81   : > { %4224 = vmatprep.subr.mxu1 %v2159_v3 }
  0x83   : > { %4129 = vmatmul.mubr.msk.f32.vlgmr.msra.gmra.mrb[0].mxu0 %vm299_vm1, %v4577_v4  ;;  %v3705_v4 = vld [vmem:[%s5202_s2] ss:$0 sm:$0xff] }
  0x84   : > { %4141 = vmatpush3.msk.msra.mxu0 %vm324_vm0, %v3695_v61  ;;  %4131 = vmatprep.mubr.msk.f32.mxu0 %vm299_vm1, %v4591_v6  ;;  %v2428_v61 = vld [vmem:[#allocation2 + $0x2] sm:$0xff] }
  0x85   : > { %4154 = vmatprep.subr.msk.mxu0 %vm324_vm0, %v3706_v63 }
  0x87   : > { %4132 = vmatmul.mubr.msk.f32.gmra.mrb[2].mxu0 %vm299_vm1, %v4594_v7 }
  0x88   : > { %4134 = vmatprep.mubr.msk.f32.mxu0 %vm299_vm1, %v4602_v8 }
  0x8b   : > { %4135 = vmatmul.mubr.msk.f32.gmra.mrb[4].mxu0 %vm299_vm1, %v4605_v9 }
  0x8c   : > { %4137 = vmatprep.mubr.msk.f32.mxu0 %vm299_vm1, %v4612_v10 }
  0x8f   : > { %4138 = vmatmul.mubr.msk.f32.gmra.mrb[6].mxu0 %vm299_vm1, %v4688_v25 }
  0x90   : > { %4142 = vmatprep.mubr.msk.f32.mxu0 %vm299_vm1, %v4681_v23 }
  0x93   : > { %4143 = vmatmul.mubr.msk.f32.vlgmr.msra.gmra.mrb[0].mxu0 %vm299_vm1, %v4685_v24 }
  0x94   : > { %4145 = vmatprep.mubr.msk.f32.mxu0 %vm299_vm1, %v4704_v27  ;;  %4155 = vmatpush3.msk.msra.mxu0 %vm324_vm0, %v3706_v63  ;;  %v3763_v27 = vld [vmem:[%s5205_s5 + $0x10] sm:$0xff] }
  0x95   : > { %4168 = vmatprep.subr.msk.mxu0 %vm324_vm0, %v1642_v0 }
  0x97   : > { %4146 = vmatmul.mubr.msk.f32.gmra.mrb[2].mxu0 %vm299_vm1, %v4707_v28 }
  0x98   : > { %4148 = vmatprep.mubr.msk.f32.mxu0 %vm299_vm1, %v4719_v29 }
  0x9b   : > { %4149 = vmatmul.mubr.msk.f32.gmra.mrb[4].mxu0 %vm299_vm1, %v4722_v30 }
  0x9c   : > { %4151 = vmatprep.mubr.msk.f32.mxu0 %vm299_vm1, %v4733_v31 }
  0x9f   : > { %4152 = vmatmul.mubr.msk.f32.gmra.mrb[6].mxu0 %vm299_vm1, %v4749_v36  ;;  %v2151_v36 = vld [vmem:[#allocation2] sm:$0xff] }
  0xa0   : > { %4156 = vmatprep.mubr.msk.f32.mxu0 %vm299_vm1, %v3633_v52 }
  0xa3   : > { %4157 = vmatmul.mubr.msk.f32.vlgmr.msra.gmra.mrb[8].mxu0 %vm299_vm1, %v3634_v53 }
  0xa4   : > { %4159 = vmatprep.mubr.msk.f32.mxu0 %vm299_vm1, %v3635_v54  ;;  %4169 = vmatpush3.msk.msra.mxu0 %vm324_vm0, %v1642_v0 }
  0xa7   : > { %4160 = vmatmul.mubr.msk.f32.gmra.mrb[10].mxu0 %vm299_vm1, %v3636_v56 }
  0xa8   : > { %4162 = vmatprep.mubr.msk.f32.mxu0 %vm299_vm1, %v3637_v57 }
  0xab   : > { %4163 = vmatmul.mubr.msk.f32.gmra.mrb[12].mxu0 %vm299_vm1, %v3638_v58 }
  0xac   : > { %4165 = vmatprep.mubr.msk.f32.mxu0 %vm299_vm1, %v3639_v59 }
  0xaf   : > { %4166 = vmatmul.mubr.msk.f32.gmra.mrb[14].mxu0 %vm299_vm1, %v3640_v60 }
  0xb0   : > { %4170 = vmatprep.mubr.msk.f32.mxu0 %vm299_vm1, %v4770_v43 }
  0xb3   : > { %4171 = vmatmul.mubr.msk.f32.vlgmr.msra.gmra.mrb[8].mxu0 %vm299_vm1, %v4776_v44 }
  0xb4   : > { %4173 = vmatprep.mubr.msk.f32.mxu0 %vm299_vm1, %v4779_v45 }
  0xb7   : > { %4174 = vmatmul.mubr.msk.f32.gmra.mrb[10].mxu0 %vm299_vm1, %v4790_v47 }
  0xb8   : > { %4176 = vmatprep.mubr.msk.f32.mxu0 %vm299_vm1, %v4793_v48 }
  0xbb   : > { %4177 = vmatmul.mubr.msk.f32.gmra.mrb[12].mxu0 %vm299_vm1, %v4801_v49 }
  0xbc   : > { %4179 = vmatprep.mubr.msk.f32.mxu0 %vm299_vm1, %v4804_v50 }
  0xbf   : > { %4180 = vmatmul.mubr.msk.f32.gmra.mrb[14].mxu0 %vm299_vm1, %v4811_v51 }
  0xf6   : > { %v4200_v38 = vpop.f32.mrb[0].mxu1 }
  0xf7   : > { %v2050_v39 = vpop.f32.mrb[1].mxu1 }
  0xfa   : > { %v4203_v40 = vpop.f32.mrb[2].mxu1 }
  0xfb   : > { %v2060_v43 = vpop.f32.mrb[3].mxu1 }
  0xfe   : > { %v4206_v45 = vpop.f32.mrb[4].mxu1 }
  0xff   : > { %v2070_v46 = vpop.f32.mrb[5].mxu1 }
 0x102   : > { %v4209_v48 = vpop.f32.mrb[6].mxu1 }
 0x103   : > { %v2080_v52 = vpop.f32.mrb[7].mxu1 }
 0x166   : > { %v4144_v5 = vpop.f32.mrb[0].mxu0 }
 0x167   : > { %v1627_v6 = vadd.f32 %v4144_v5, %v3705_v4  ;;  %v1572_v7 = vpop.f32.mrb[1].mxu0  ;;  %v3781_v5 = vld [vmem:[%s5205_s5 + $0x20] sm:$0xff] }
 0x168   : > { %v1626_v8 = vadd.f32 %v3705_v4, %v1572_v7 }
 0x169   : > { %v1635_v9 = vmax.f32 %v1627_v6, 0.0 }
 0x16a   : > { %v1634_v10 = vmax.f32 %v1626_v8, 0.0  ;;  %v4147_v11 = vpop.f32.mrb[2].mxu0 }
 0x16b   : > { %2144 = vst.msk [vmem:[#allocation2 + $0x21] sm:$0xff] %vm2120_vm2, %v1635_v9  ;;  %v1629_v12 = vadd.f32 %v4147_v11, %v3705_v4  ;;  %v1582_v13 = vpop.f32.mrb[3].mxu0 }
 0x16c   : > { %2143 = vst.msk [vmem:[#allocation2 + $0x11] sm:$0xff] %vm2120_vm2, %v1634_v10  ;;  %v1628_v14 = vadd.f32 %v3705_v4, %v1582_v13 }
 0x16d   : > { %v1637_v15 = vmax.f32 %v1629_v12, 0.0 }
 0x16e   : > { %v1636_v16 = vmax.f32 %v1628_v14, 0.0  ;;  %v4150_v17 = vpop.f32.mrb[4].mxu0 }
 0x16f   : > { %2146 = vst.msk [vmem:[#allocation2 + $0x41] sm:$0xff] %vm2120_vm2, %v1637_v15  ;;  %v1631_v18 = vadd.f32 %v4150_v17, %v3705_v4  ;;  %v1592_v19 = vpop.f32.mrb[5].mxu0  ;;  %v3790_v15 = vld [vmem:[%s5205_s5 + $0x28] sm:$0xff]  ;;  %v3799_v17 = vld [vmem:[%s5205_s5 + $0x30] sm:$0xff] }
 0x170   : > { %2145 = vst.msk [vmem:[#allocation2 + $0x31] sm:$0xff] %vm2120_vm2, %v1636_v16  ;;  %v1630_v20 = vadd.f32 %v3705_v4, %v1592_v19  ;;  %v3808_v19 = vld [vmem:[%s5205_s5 + $0x38] sm:$0xff] }
 0x171   : > { %v1639_v21 = vmax.f32 %v1631_v18, 0.0 }
 0x172   : > { %v1638_v22 = vmax.f32 %v1630_v20, 0.0  ;;  %v4153_v23 = vpop.f32.mrb[6].mxu0  ;;  %v4964_v29 = vld [vmem:[#allocation2 + $0x21] sm:$0xff] }
 0x173   : > { %2148 = vst.msk [vmem:[#allocation2 + $0x61] sm:$0xff] %vm2120_vm2, %v1639_v21  ;;  %v1633_v24 = vadd.f32 %v4153_v23, %v3705_v4  ;;  %v1602_v25 = vpop.f32.mrb[7].mxu0  ;;  %v4956_v26 = vld [vmem:[#allocation2 + $0x11] sm:$0xff]  ;;  %v4995_v44 = vld [vmem:[#allocation2 + $0x20] sm:$0xff] }
 0x174   : > { %2147 = vst.msk [vmem:[#allocation2 + $0x51] sm:$0xff] %vm2120_vm2, %v1638_v22  ;;  %v1632_v28 = vadd.f32 %v3705_v4, %v1602_v25  ;;  %4213 = vmatmul.mubr.msk.f32.vlgmr.msra.gmra.mrb[8].mxu1 %vm2120_vm2, %v4956_v26  ;;  %v2152_v41 = vld [vmem:[#allocation2 + $0x10] sm:$0xff]  ;;  %v5038_v8 = vld [vmem:[#allocation2 + $0x22] sm:$0xff]  ;;  %v3745_v25 = vld [vmem:[%s5204_s4] ss:$0 sm:$0xff] }
 0x175   : > { %v1641_v30 = vmax.f32 %v1633_v24, 0.0  ;;  %4225 = vmatpush3.msra.mxu1 %v2159_v3  ;;  %4215 = vmatprep.mubr.msk.f32.mxu1 %vm2120_vm2, %v4964_v29  ;;  %v2429_v4 = vld [vmem:[#allocation2 + $0x12] sm:$0xff]  ;;  %v3817_v21 = vld [vmem:[%s5205_s5 + $0x40] sm:$0xff] }
 0x176   : > { %v1640_v31 = vmax.f32 %v1632_v28, 0.0  ;;  %4238 = vmatprep.subr.mxu1 %v3763_v27  ;;  %v4974_v33 = vld [vmem:[#allocation2 + $0x41] sm:$0xff]  ;;  %v3024_v22 = vld [vmem:[#allocation2 + $0x90] sm:$0xff] }
 0x177   : > { %2150 = vst.msk [vmem:[#allocation2 + $0x81] sm:$0xff] %vm2120_vm2, %v1641_v30  ;;  %v4969_v32 = vld [vmem:[#allocation2 + $0x31] sm:$0xff]  ;;  %v5005_v53 = vld [vmem:[#allocation2 + $0x40] sm:$0xff] }
 0x178   : > { %2149 = vst.msk [vmem:[#allocation2 + $0x71] sm:$0xff] %vm2120_vm2, %v1640_v31  ;;  %4216 = vmatmul.mubr.msk.f32.gmra.mrb[10].mxu1 %vm2120_vm2, %v4969_v32  ;;  %v4999_v49 = vld [vmem:[#allocation2 + $0x30] sm:$0xff]  ;;  %v5048_v11 = vld [vmem:[#allocation2 + $0x42] sm:$0xff] }
 0x179   : > { %4218 = vmatprep.mubr.msk.f32.mxu1 %vm2120_vm2, %v4974_v33  ;;  %v5044_v10 = vld [vmem:[#allocation2 + $0x32] sm:$0xff] }
 0x17a   : > { %v4982_v35 = vld [vmem:[#allocation2 + $0x61] sm:$0xff]  ;;  %v3171_v23 = vld [vmem:[#allocation2 + $0x91] sm:$0xff] }
 0x17b   : > { %v4978_v34 = vld [vmem:[#allocation2 + $0x51] sm:$0xff]  ;;  %v5017_v59 = vld [vmem:[#allocation2 + $0x60] sm:$0xff] }
 0x17c   : > { %4219 = vmatmul.mubr.msk.f32.gmra.mrb[12].mxu1 %vm2120_vm2, %v4978_v34  ;;  %v5011_v56 = vld [vmem:[#allocation2 + $0x50] sm:$0xff]  ;;  %v5056_v13 = vld [vmem:[#allocation2 + $0x62] sm:$0xff] }
 0x17d   : > { %4221 = vmatprep.mubr.msk.f32.mxu1 %vm2120_vm2, %v4982_v35  ;;  %v5052_v12 = vld [vmem:[#allocation2 + $0x52] sm:$0xff] }
 0x17e   : > { %v2582_v16 = vld [vmem:[#allocation2 + $0x80] sm:$0xff]  ;;  %v3318_v24 = vld [vmem:[#allocation2 + $0x92] sm:$0xff] }
 0x17f   : > { %v4986_v37 = vld [vmem:[#allocation2 + $0x71] sm:$0xff]  ;;  %v2729_v18 = vld [vmem:[#allocation2 + $0x81] sm:$0xff] }
 0x180   : > { %4222 = vmatmul.mubr.msk.f32.gmra.mrb[14].mxu1 %vm2120_vm2, %v4986_v37  ;;  %v5023_v63 = vld [vmem:[#allocation2 + $0x70] sm:$0xff]  ;;  %v2876_v20 = vld [vmem:[#allocation2 + $0x82] sm:$0xff] }
 0x181   : > { %4226 = vmatprep.mubr.msk.f32.mxu1 %vm2120_vm2, %v2151_v36  ;;  %v5060_v14 = vld [vmem:[#allocation2 + $0x72] sm:$0xff] }
 0x184   : > { %4227 = vmatmul.mubr.msk.f32.vlgmr.msra.gmra.mrb[8].mxu1 %vm2120_vm2, %v2152_v41 }
 0x185   : > { %4239 = vmatpush3.msra.mxu1 %v3763_v27  ;;  %4229 = vmatprep.mubr.msk.f32.mxu1 %vm2120_vm2, %v4995_v44 }
 0x186   : > { %4252 = vmatprep.subr.mxu1 %v3772_v42  ;;  %v4172_v47 = vpop.f32.mrb[8].mxu0 }
 0x187   : > { %v5001_v50 = vadd.f32 %v4200_v38, %v4172_v47  ;;  %v1822_v51 = vpop.f32.mrb[9].mxu0 }
 0x188   : > { %4230 = vmatmul.mubr.msk.f32.gmra.mrb[10].mxu1 %vm2120_vm2, %v4999_v49  ;;  %v5007_v54 = vadd.f32 %v2050_v39, %v1822_v51 }
 0x189   : > { %4232 = vmatprep.mubr.msk.f32.mxu1 %vm2120_vm2, %v5005_v53  ;;  %v2105_v27 = vadd.f32 %v5001_v50, %v3745_v25 }
 0x18a   : > { %v4175_v55 = vpop.f32.mrb[10].mxu0  ;;  %v2104_v28 = vadd.f32 %v5007_v54, %v3745_v25 }
 0x18b   : > { %v5013_v57 = vadd.f32 %v4203_v40, %v4175_v55  ;;  %v1832_v58 = vpop.f32.mrb[11].mxu0 }
 0x18c   : > { %4233 = vmatmul.mubr.msk.f32.gmra.mrb[12].mxu1 %vm2120_vm2, %v5011_v56  ;;  %v5019_v60 = vadd.f32 %v2060_v43, %v1832_v58  ;;  %v2112_v36 = vmax.f32 %v2104_v28, 0.0 }
 0x18d   : > { %4235 = vmatprep.mubr.msk.f32.mxu1 %vm2120_vm2, %v5017_v59 }
 0x18e   : > { %v4178_v62 = vpop.f32.mrb[12].mxu0 }
 0x18f   : > { %v5025_v0 = vadd.f32 %v4206_v45, %v4178_v62  ;;  %v1842_v1 = vpop.f32.mrb[13].mxu0 }
 0x190   : > { %4236 = vmatmul.mubr.msk.f32.gmra.mrb[14].mxu1 %vm2120_vm2, %v5023_v63  ;;  %v5029_v2 = vadd.f32 %v2070_v46, %v1842_v1 }
 0x191   : > { %4240 = vmatprep.mubr.msk.f32.mxu1 %vm2120_vm2, %v2428_v61  ;;  %v2109_v46 = vadd.f32 %v5025_v0, %v3745_v25 }
 0x192   : > { %v4181_v3 = vpop.f32.mrb[14].mxu0 }
 0x193   : > { %v5035_v6 = vadd.f32 %v4209_v48, %v4181_v3  ;;  %v1852_v7 = vpop.f32.mrb[15].mxu0 }
 0x194   : > { %4241 = vmatmul.mubr.msk.f32.vlgmr.msra.gmra.mrb[8].mxu1 %vm2120_vm2, %v2429_v4  ;;  %v5040_v9 = vadd.f32 %v2080_v52, %v1852_v7 }
 0x195   : > { %4253 = vmatpush3.msra.mxu1 %v3772_v42  ;;  %4243 = vmatprep.mubr.msk.f32.mxu1 %vm2120_vm2, %v5038_v8  ;;  %v2111_v58 = vadd.f32 %v5035_v6, %v3745_v25 }
 0x196   : > { %4266 = vmatprep.subr.mxu1 %v3781_v5  ;;  %v2110_v61 = vadd.f32 %v5040_v9, %v3745_v25 }
 0x198   : > { %4244 = vmatmul.mubr.msk.f32.gmra.mrb[10].mxu1 %vm2120_vm2, %v5044_v10  ;;  %v2118_v7 = vmax.f32 %v2110_v61, 0.0 }
 0x199   : > { %4246 = vmatprep.mubr.msk.f32.mxu1 %vm2120_vm2, %v5048_v11 }
 0x19c   : > { %4247 = vmatmul.mubr.msk.f32.gmra.mrb[12].mxu1 %vm2120_vm2, %v5052_v12 }
 0x19d   : > { %4249 = vmatprep.mubr.msk.f32.mxu1 %vm2120_vm2, %v5056_v13 }
 0x1a0   : > { %4250 = vmatmul.mubr.msk.f32.gmra.mrb[14].mxu1 %vm2120_vm2, %v5060_v14 }
 0x1a1   : > { %4254 = vmatprep.mubr.msk.f32.mxu1 %vm2120_vm2, %v2152_v41 }
 0x1a4   : > { %4255 = vmatmul.mubr.msk.f32.vlgmr.msra.gmra.mrb[8].mxu1 %vm2120_vm2, %v4995_v44 }
 0x1a5   : > { %4267 = vmatpush3.msra.mxu1 %v3781_v5  ;;  %4257 = vmatprep.mubr.msk.f32.mxu1 %vm2120_vm2, %v4999_v49  ;;  %v2119_v5 = vmax.f32 %v2111_v58, 0.0 }
 0x1a6   : > { %4280 = vmatprep.subr.mxu1 %v3790_v15 }
 0x1a8   : > { %4258 = vmatmul.mubr.msk.f32.gmra.mrb[10].mxu1 %vm2120_vm2, %v5005_v53 }
 0x1a9   : > { %4260 = vmatprep.mubr.msk.f32.mxu1 %vm2120_vm2, %v5011_v56 }
 0x1ac   : > { %4261 = vmatmul.mubr.msk.f32.gmra.mrb[12].mxu1 %vm2120_vm2, %v5017_v59 }
 0x1ad   : > { %4263 = vmatprep.mubr.msk.f32.mxu1 %vm2120_vm2, %v5023_v63 }
 0x1b0   : > { %4264 = vmatmul.mubr.msk.f32.gmra.mrb[14].mxu1 %vm2120_vm2, %v2582_v16 }
 0x1b1   : > { %4268 = vmatprep.mubr.msk.f32.mxu1 %vm2120_vm2, %v4956_v26  ;;  %v3826_v26 = vld [vmem:[%s5206_s6] ss:$0 sm:$0xff] }
 0x1b4   : > { %4269 = vmatmul.mubr.msk.f32.vlgmr.msra.gmra.mrb[8].mxu1 %vm2120_vm2, %v4964_v29 }
 0x1b5   : > { %4281 = vmatpush3.msra.mxu1 %v3790_v15  ;;  %4271 = vmatprep.mubr.msk.f32.mxu1 %vm2120_vm2, %v4969_v32 }
 0x1b6   : > { %4294 = vmatprep.subr.mxu1 %v3799_v17 }
 0x1b8   : > { %4272 = vmatmul.mubr.msk.f32.gmra.mrb[10].mxu1 %vm2120_vm2, %v4974_v33 }
 0x1b9   : > { %4274 = vmatprep.mubr.msk.f32.mxu1 %vm2120_vm2, %v4978_v34 }
 0x1bc   : > { %4275 = vmatmul.mubr.msk.f32.gmra.mrb[12].mxu1 %vm2120_vm2, %v4982_v35 }
 0x1bd   : > { %4277 = vmatprep.mubr.msk.f32.mxu1 %vm2120_vm2, %v4986_v37 }
 0x1c0   : > { %4278 = vmatmul.mubr.msk.f32.gmra.mrb[14].mxu1 %vm2120_vm2, %v2729_v18 }
 0x1c1   : > { %4282 = vmatprep.mubr.msk.f32.mxu1 %vm2120_vm2, %v2429_v4 }
 0x1c4   : > { %4283 = vmatmul.mubr.msk.f32.vlgmr.msra.gmra.mrb[8].mxu1 %vm2120_vm2, %v5038_v8 }
 0x1c5   : > { %4295 = vmatpush3.msra.mxu1 %v3799_v17  ;;  %4285 = vmatprep.mubr.msk.f32.mxu1 %vm2120_vm2, %v5044_v10 }
 0x1c6   : > { %4308 = vmatprep.subr.mxu1 %v3808_v19 }
 0x1c8   : > { %4286 = vmatmul.mubr.msk.f32.gmra.mrb[10].mxu1 %vm2120_vm2, %v5048_v11 }
 0x1c9   : > { %4288 = vmatprep.mubr.msk.f32.mxu1 %vm2120_vm2, %v5052_v12 }
 0x1cc   : > { %4289 = vmatmul.mubr.msk.f32.gmra.mrb[12].mxu1 %vm2120_vm2, %v5056_v13 }
 0x1cd   : > { %4291 = vmatprep.mubr.msk.f32.mxu1 %vm2120_vm2, %v5060_v14 }
 0x1d0   : > { %4292 = vmatmul.mubr.msk.f32.gmra.mrb[14].mxu1 %vm2120_vm2, %v2876_v20 }
 0x1d1   : > { %4296 = vmatprep.mubr.msk.f32.mxu1 %vm2120_vm2, %v4995_v44 }
 0x1d4   : > { %4297 = vmatmul.mubr.msk.f32.vlgmr.msra.gmra.mrb[8].mxu1 %vm2120_vm2, %v4999_v49  ;;  %v2108_v49 = vadd.f32 %v5029_v2, %v3745_v25 }
 0x1d5   : > { %4309 = vmatpush3.msra.mxu1 %v3808_v19  ;;  %4299 = vmatprep.mubr.msk.f32.mxu1 %vm2120_vm2, %v5005_v53 }
 0x1d6   : > { %4322 = vmatprep.subr.mxu1 %v3817_v21 }
 0x1d8   : > { %4300 = vmatmul.mubr.msk.f32.gmra.mrb[10].mxu1 %vm2120_vm2, %v5011_v56 }
 0x1d9   : > { %4302 = vmatprep.mubr.msk.f32.mxu1 %vm2120_vm2, %v5017_v59 }
 0x1dc   : > { %4303 = vmatmul.mubr.msk.f32.gmra.mrb[12].mxu1 %vm2120_vm2, %v5023_v63 }
 0x1dd   : > { %4305 = vmatprep.mubr.msk.f32.mxu1 %vm2120_vm2, %v2582_v16 }
 0x1e0   : > { %4306 = vmatmul.mubr.msk.f32.gmra.mrb[14].mxu1 %vm2120_vm2, %v3024_v22 }
 0x1e1   : > { %4310 = vmatprep.mubr.msk.f32.mxu1 %vm2120_vm2, %v4964_v29 }
 0x1e4   : > { %4311 = vmatmul.mubr.msk.f32.vlgmr.msra.gmra.mrb[8].mxu1 %vm2120_vm2, %v4969_v32 }
 0x1e5   : > { %4323 = vmatpush3.msra.mxu1 %v3817_v21  ;;  %4313 = vmatprep.mubr.msk.f32.mxu1 %vm2120_vm2, %v4974_v33  ;;  %v2113_v33 = vmax.f32 %v2105_v27, 0.0 }
 0x1e8   : > { %4314 = vmatmul.mubr.msk.f32.gmra.mrb[10].mxu1 %vm2120_vm2, %v4978_v34  ;;  %v2107_v34 = vadd.f32 %v5013_v57, %v3745_v25  ;;  %v2117_v57 = vmax.f32 %v2109_v46, 0.0 }
 0x1e9   : > { %4316 = vmatprep.mubr.msk.f32.mxu1 %vm2120_vm2, %v4982_v35 }
 0x1ea   : > { %v2115_v45 = vmax.f32 %v2107_v34, 0.0 }
 0x1ec   : > { %4317 = vmatmul.mubr.msk.f32.gmra.mrb[12].mxu1 %vm2120_vm2, %v4986_v37  ;;  %v2106_v37 = vadd.f32 %v5019_v60, %v3745_v25  ;;  %v2116_v60 = vmax.f32 %v2108_v49, 0.0 }
 0x1ed   : > { %4319 = vmatprep.mubr.msk.f32.mxu1 %vm2120_vm2, %v2729_v18 }
 0x1ee   : > { %v2114_v48 = vmax.f32 %v2106_v37, 0.0 }
 0x1f0   : > { %4320 = vmatmul.mubr.msk.f32.gmra.mrb[14].mxu1 %vm2120_vm2, %v3171_v23 }
 0x1f1   : > { %4324 = vmatprep.mubr.msk.f32.mxu1 %vm2120_vm2, %v5038_v8 }
 0x1f4   : > { %4325 = vmatmul.mubr.msk.f32.vlgmr.msra.gmra.mrb[8].mxu1 %vm2120_vm2, %v5044_v10 }
 0x1f5   : > { %4327 = vmatprep.mubr.msk.f32.mxu1 %vm2120_vm2, %v5048_v11 }
 0x1f8   : > { %4328 = vmatmul.mubr.msk.f32.gmra.mrb[10].mxu1 %vm2120_vm2, %v5052_v12 }
 0x1f9   : > { %4330 = vmatprep.mubr.msk.f32.mxu1 %vm2120_vm2, %v5056_v13 }
 0x1fc   : > { %4331 = vmatmul.mubr.msk.f32.gmra.mrb[12].mxu1 %vm2120_vm2, %v5060_v14 }
 0x1fd   : > { %4333 = vmatprep.mubr.msk.f32.mxu1 %vm2120_vm2, %v2876_v20 }
 0x200   : > { %4334 = vmatmul.mubr.msk.f32.gmra.mrb[14].mxu1 %vm2120_vm2, %v3318_v24 }
 0x2c7   : > { %v4326_v29 = vpop.f32.mrb[8].mxu1 }
 0x2c8   : > { %v3466_v30 = vadd.f32 %v4326_v29, %v3826_v26  ;;  %v3411_v31 = vpop.f32.mrb[9].mxu1 }
 0x2c9   : > { %v3465_v32 = vadd.f32 %v3826_v26, %v3411_v31 }
 0x2ca   : > { %v3474_v35 = vmax.f32 %v3466_v30, 0.0 }
 0x2cb   : > { %v3473_v38 = vmax.f32 %v3465_v32, 0.0  ;;  %v4329_v39 = vpop.f32.mrb[10].mxu1 }
 0x2cc   : > { %v3482_v40 = vadd.f32 %v3474_v35, %v2113_v33  ;;  %v3468_v41 = vadd.f32 %v4329_v39, %v3826_v26  ;;  %v3421_v42 = vpop.f32.mrb[11].mxu1 }
 0x2cd   : > { %v3481_v43 = vadd.f32 %v3473_v38, %v2112_v36  ;;  %v3467_v44 = vadd.f32 %v3826_v26, %v3421_v42 }
 0x2ce   : > { %3490 = vst.msk [vmem:[%s5175_s18 + $0x8] sm:$0xff] %vm2120_vm2, %v3482_v40  ;;  %v3476_v47 = vmax.f32 %v3468_v41, 0.0 }
 0x2cf   : > { %3489 = vst.msk [vmem:[%s5175_s18] sm:$0xff] %vm2120_vm2, %v3481_v43  ;;  %v3475_v50 = vmax.f32 %v3467_v44, 0.0  ;;  %v4332_v51 = vpop.f32.mrb[12].mxu1 }
 0x2d0   : > { %v3484_v52 = vadd.f32 %v3476_v47, %v2115_v45  ;;  %v3470_v53 = vadd.f32 %v4332_v51, %v3826_v26  ;;  %v3431_v54 = vpop.f32.mrb[13].mxu1 }
 0x2d1   : > { %v3483_v55 = vadd.f32 %v3475_v50, %v2114_v48  ;;  %v3469_v56 = vadd.f32 %v3826_v26, %v3431_v54 }
 0x2d2   : > { %3492 = vst.msk [vmem:[%s5175_s18 + $0x18] sm:$0xff] %vm2120_vm2, %v3484_v52  ;;  %v3478_v59 = vmax.f32 %v3470_v53, 0.0 }
 0x2d3   : > { %3491 = vst.msk [vmem:[%s5175_s18 + $0x10] sm:$0xff] %vm2120_vm2, %v3483_v55  ;;  %v3477_v62 = vmax.f32 %v3469_v56, 0.0  ;;  %v4335_v63 = vpop.f32.mrb[14].mxu1 }
 0x2d4   : > { %v3486_v0 = vadd.f32 %v3478_v59, %v2117_v57  ;;  %v3472_v1 = vadd.f32 %v4335_v63, %v3826_v26  ;;  %v3441_v2 = vpop.f32.mrb[15].mxu1 }
 0x2d5   : > { %v3485_v3 = vadd.f32 %v3477_v62, %v2116_v60  ;;  %v3471_v4 = vadd.f32 %v3826_v26, %v3441_v2 }
 0x2d6   : > { %3494 = vst.msk [vmem:[%s5175_s18 + $0x28] sm:$0xff] %vm2120_vm2, %v3486_v0  ;;  %v3480_v6 = vmax.f32 %v3472_v1, 0.0 }
 0x2d7   : > { %3493 = vst.msk [vmem:[%s5175_s18 + $0x20] sm:$0xff] %vm2120_vm2, %v3485_v3  ;;  %v3479_v8 = vmax.f32 %v3471_v4, 0.0 }
 0x2d8   : > { %v3488_v9 = vadd.f32 %v3480_v6, %v2119_v5 }
 0x2d9   : > { %v3487_v10 = vadd.f32 %v3479_v8, %v2118_v7 }
 0x2da   : > { %3496 = vst.msk [vmem:[%s5175_s18 + $0x38] sm:$0xff] %vm2120_vm2, %v3488_v9 }
 0x2db   : > { %3495 = vst.msk [vmem:[%s5175_s18 + $0x30] sm:$0xff] %vm2120_vm2, %v3487_v10 }
 0x2dc PF: > { %s17_s24 = sadd.s32 1, %s4504_s24  }
 0x2dd   : > { %p14_p4 = scmp.ge.s32.totalorder %s17_s24, 4  }
 0x2df   :  { %16 = sbr.rel (!%p14_p4) target bundleno = 1 (0x1), region = 104 }

</bundles_post_ra>
